<compile_context>
chip_gen: v7x
topology: tpu7x:2x2x1
jax: 0.10.0
libtpu: 0.0.40
codegen_flags: <defaults>
</compile_context>

<pallas_src>
import jax
import jax.numpy as jnp
from jax.experimental import pallas as pl
from jax.experimental.pallas import tpu as pltpu


def _fused_kernel(l_ref, rw_ref, bias_ref, inv_ref, expand_ref, out_ref):
    """One (j_tile, i_tile) block of out[i, (j,f)] with fused bias + mask-norm finalize.

    l_ref:      (Ti, K)      K = S*P, compute dtype (bf16 or f32)
    rw_ref:     (K, Tj*F)    pre-contracted r . W, compute dtype
    bias_ref:   (1, Tj*F)    f32, bias tiled along the packed (j,f) lane axis
    inv_ref:    (Ti, Tj)     compute dtype, 1 / (mask-norm + 1e-3) (precomputed)
    expand_ref: (Tj, Tj*F)   compute dtype, constant 0/1 selection matrix (resident)
    out_ref:    (Ti, Tj*F)   lane-dense output slab
    """
    # Main contraction over K = S*P on the MXU, f32 accumulation.
    acc = jnp.dot(l_ref[...], rw_ref[...], preferred_element_type=jnp.float32)
    # Expand inv (Ti, Tj) -> (Ti, Tj*F): selection matmul against a constant that is
    # DMA'd once (constant index_map).  Exactly one nonzero term per output, so it is
    # exact in the f32 path; in the bf16 path it runs at full bf16 MXU rate.
    scale = jnp.dot(inv_ref[...], expand_ref[...], preferred_element_type=jnp.float32)
    out_ref[...] = ((acc + bias_ref[...]) * scale).astype(out_ref.dtype)


def _col_tile(L):
    # Output lanes need Tj*F % 128 == 0; the inv block needs Tj % 128 == 0 or Tj == L.
    for t in (128, 256, 384, 512):
        if L % t == 0:
            return t
    return L  # TODO(synk): pad L to a multiple of 128 for long/ragged sequences.


def _row_tile(L, need_i_split):
    # Prefer big tiles (amortize ~0.35us/step overhead, longer unmasked vst streams).
    # If the j-axis degenerated to a single block, keep >=2 blocks on the i-axis so
    # v7x's two TensorCores both get work.
    cands = (256, 128, 64, 32, 16, 8)
    if need_i_split:
        for t in cands:
            if L % t == 0 and L // t >= 2:
                return t
    for t in cands:
        if L % t == 0:
            return t
    return L


def node2edge(node_repr, mask, w_in, b_in, out_weights, out_bias,
              *, compute_dtype=jnp.bfloat16, out_dtype=jnp.float32):
    """Node2Edge forward. node_repr (S,L,C), mask (S,L) -> (L, L, out_dim)."""
    S, L, C = node_repr.shape
    P, _, F = out_weights.shape
    K = S * P

    # ---- cheap glue (O(S*L) work): layer norm (no affine, eps=1e-5), projection ----
    mu = jnp.mean(node_repr, axis=-1, keepdims=True)
    var = jnp.var(node_repr, axis=-1, keepdims=True)
    x = ((node_repr - mu) * jax.lax.rsqrt(var + 1e-5)).astype(compute_dtype)

    w_l = w_in[:P].astype(compute_dtype)
    w_r = w_in[P:].astype(compute_dtype)
    b_l = b_in[:P].astype(compute_dtype)
    b_r = b_in[P:].astype(compute_dtype)
    w_out = out_weights.astype(compute_dtype)
    mask_c = mask.astype(compute_dtype)        # 0/1, exact in bf16

    # l produced directly in (L, S, P) order -> (L, S*P): no standalone HBM transpose.
    # f32 accumulation inside the dot, convert fused into the epilogue (no extra pass).
    l = (jnp.einsum('slc,pc->lsp', x, w_l,
                    preferred_element_type=jnp.float32).astype(compute_dtype)
         + b_l) * mask_c.T[..., None]                                        # (L, S, P)
    l2 = l.reshape(L, K)

    r = (jnp.einsum('slc,pc->slp', x, w_r,
                    preferred_element_type=jnp.float32).astype(compute_dtype)
         + b_r) * mask_c[..., None]                                          # (S, L, P)
    # Pre-contract r with out_weights over e (tiny: O(S*L*P^2*F)); rows = (s,d),
    # lanes = (j,f) so the kernel output is lane-dense.  Produced in compute_dtype.
    rw2 = jnp.einsum('sje,def->sdjf', r, w_out,
                     preferred_element_type=jnp.float32
                     ).astype(compute_dtype).reshape(K, L * F)

    # mask norm reciprocal precomputed in the wrapper (one cheap fused XLA pass over
    # an L^2 array); compute_dtype so the in-kernel expansion matmul is bf16 on the
    # production path and exact f32 on the f32 path.
    norm = jnp.einsum('si,sj->ij', mask, mask)
    inv = (1.0 / (norm + 0.001)).astype(compute_dtype)                       # (L, L)

    bias_rep = jnp.tile(out_bias.astype(jnp.float32), L)[None, :]            # (1, L*F)

    tj = _col_tile(L)
    ti = _row_tile(L, need_i_split=(L // tj < 2))

    # Constant 0/1 selection matrix: expand[row, j*F + f] = (row == j).
    expand = (jnp.arange(tj)[:, None]
              == (jnp.arange(tj * F)[None, :] // F)).astype(compute_dtype)   # (tj, tj*F)

    # VMEM budget: double-buffered block bytes + headroom, clamped so it is safe on
    # v7x's 64 MiB/TC and generous on v5e/v6e's 128 MiB.
    esz = jnp.dtype(compute_dtype).itemsize
    osz = jnp.dtype(out_dtype).itemsize
    block_bytes = (ti * K * esz            # l2 block
                   + K * tj * F * esz      # rW block
                   + tj * F * 4            # bias block (f32)
                   + ti * tj * esz         # inv block
                   + tj * tj * F * esz     # expand (resident)
                   + ti * tj * F * osz)    # out block
    vmem_limit = int(min(max(2 * block_bytes + (8 << 20), 32 << 20), 48 << 20))

    # Grid order: j outer, i inner -> the rW operand is streamed once per j and stays
    # resident across i; both axes independent ("parallel") for megacore sharding.
    out2 = pl.pallas_call(
        _fused_kernel,
        out_shape=jax.ShapeDtypeStruct((L, L * F), out_dtype),
        grid=(L // tj, L // ti),
        in_specs=[
            pl.BlockSpec((ti, K), lambda j, i: (i, 0)),           # l2
            pl.BlockSpec((K, tj * F), lambda j, i: (0, j)),       # rW
            pl.BlockSpec((1, tj * F), lambda j, i: (0, j)),       # tiled bias
            pl.BlockSpec((ti, tj), lambda j, i: (i, j)),          # 1/(norm + 1e-3)
            pl.BlockSpec((tj, tj * F), lambda j, i: (0, 0)),      # expand (resident)
        ],
        out_specs=pl.BlockSpec((ti, tj * F), lambda j, i: (i, j)),
        compiler_params=pltpu.CompilerParams(
            dimension_semantics=("parallel", "parallel"),
            vmem_limit_bytes=vmem_limit,
        ),
        cost_estimate=pl.CostEstimate(
            flops=2 * L * L * F * K + 2 * L * L * F * tj,
            transcendentals=0,
            bytes_accessed=(L * L * F * osz      # output writeback (dominant)
                            + L * K * esz        # l2
                            + K * L * F * esz    # rW
                            + L * L * esz        # inv
                            + L * F * 4),        # bias
        ),
    )(l2, rw2, bias_rep, inv, expand)

    return out2.reshape(L, L, F)


def node2edge_ref(node_repr, mask, w_in, b_in, out_weights, out_bias):
    """Plain-JAX reference mirroring the PyTorch/tinygrad forward."""
    mu = jnp.mean(node_repr, axis=-1, keepdims=True)
    var = jnp.var(node_repr, axis=-1, keepdims=True)
    x = (node_repr - mu) * jax.lax.rsqrt(var + 1e-5)
    act = jnp.einsum('slc,pc->slp', x, w_in) + b_in
    act = act * mask[..., None]
    P = out_weights.shape[0]
    l, r = act[..., :P], act[..., P:]
    norm = jnp.einsum('si,sj->ij', mask, mask)[..., None]
    out = jnp.einsum('sid,def,sje->ijf', l, out_weights, r) + out_bias
    return out / (norm + 0.001)


def _run_case(name, S, L, C, P, F, compute_dtype, rtol, atol):
    key = jax.random.PRNGKey(0)
    k1, k2, k3, k4, k5, k6 = jax.random.split(key, 6)

    node_repr = jax.random.normal(k1, (S, L, C), dtype=jnp.float32)
    mask = (jax.random.uniform(k2, (S, L)) > 0.2).astype(jnp.float32)

    w_in = jax.random.normal(k3, (2 * P, C), dtype=jnp.float32) * 0.1
    b_in = jax.random.normal(k4, (2 * P,), dtype=jnp.float32) * 0.1
    out_weights = jax.random.normal(k5, (P, P, F), dtype=jnp.float32) * 0.1
    out_bias = jax.random.normal(k6, (F,), dtype=jnp.float32) * 0.1

    out = node2edge(node_repr, mask, w_in, b_in, out_weights, out_bias,
                    compute_dtype=compute_dtype)
    out = jax.block_until_ready(out)

    expected = node2edge_ref(node_repr, mask, w_in, b_in, out_weights, out_bias)
    assert out.shape == (L, L, F), (name, out.shape)
    max_err = float(jnp.max(jnp.abs(out - expected)))
    assert jnp.allclose(out, expected, rtol=rtol, atol=atol), (name, max_err)


if __name__ == "__main__":
    # Small f32 case: exact-path check (Tj = L, i-axis split into 2 blocks).
    _run_case("f32", S=4, L=64, C=32, P=16, F=32,
              compute_dtype=jnp.float32, rtol=1e-4, atol=1e-4)
    # bf16 compute (the fast production path): exercises Ti=256 / Tj=128 tiles, the
    # resident expand matrix and lane-dense (Tj*F) output blocks; looser tolerance
    # covers bf16 input rounding (accumulation stays f32 via preferred_element_type).
    _run_case("bf16", S=4, L=256, C=32, P=16, F=32,
              compute_dtype=jnp.bfloat16, rtol=5e-2, atol=5e-2)
    print("KERNEL_OK")
</pallas_src>

<mosaic_0001>
module attributes {stable_mosaic.version = 11 : i64} {
  func.func @_fused_kernel(%arg0: i32, %arg1: i32, %arg2: memref<32x64xf32, #tpu.memory_space<vmem>>, %arg3: memref<64x2048xf32, #tpu.memory_space<vmem>>, %arg4: memref<1x2048xf32, #tpu.memory_space<vmem>>, %arg5: memref<32x64xf32, #tpu.memory_space<vmem>>, %arg6: memref<64x2048xf32, #tpu.memory_space<vmem>>, %arg7: memref<32x2048xf32, #tpu.memory_space<vmem>>) attributes {dimension_semantics = [#tpu.dimension_semantics<parallel>, #tpu.dimension_semantics<parallel>], iteration_bounds = array<i64: 1, 2>, scalar_prefetch = 0 : i64, scratch_operands = 0 : i64, tpu.core_type = #tpu.core_type<tc>, window_params = [{transform_indices = @transform_0, window_bounds = array<i64: 32, 64>}, {transform_indices = @transform_1, window_bounds = array<i64: 64, 2048>}, {transform_indices = @transform_2, window_bounds = array<i64: 1, 2048>}, {transform_indices = @transform_3, window_bounds = array<i64: 32, 64>}, {pipeline_mode = #tpu.pipeline_mode<synchronous>, transform_indices = @transform_4, window_bounds = array<i64: 64, 2048>}, {transform_indices = @transform_5, window_bounds = array<i64: 32, 2048>}]} {
    %c0 = arith.constant 0 : index
    %c0_0 = arith.constant 0 : index
    %0 = vector.load %arg2[%c0, %c0_0] : memref<32x64xf32, #tpu.memory_space<vmem>>, vector<32x64xf32>
    %c0_1 = arith.constant 0 : index
    %c0_2 = arith.constant 0 : index
    %1 = vector.load %arg3[%c0_1, %c0_2] : memref<64x2048xf32, #tpu.memory_space<vmem>>, vector<64x2048xf32>
    %cst = arith.constant dense<0.000000e+00> : vector<32x2048xf32>
    %2 = tpu.matmul %0, %1, %cst {dimension_numbers = #tpu.dot_dimension_numbers<[1], [0], [0], [1], [0, 0, 1, 1], [], []>} : vector<32x64xf32>, vector<64x2048xf32>, vector<32x2048xf32> -> vector<32x2048xf32>
    %c0_3 = arith.constant 0 : index
    %c0_4 = arith.constant 0 : index
    %3 = vector.load %arg5[%c0_3, %c0_4] : memref<32x64xf32, #tpu.memory_space<vmem>>, vector<32x64xf32>
    %c0_5 = arith.constant 0 : index
    %c0_6 = arith.constant 0 : index
    %4 = vector.load %arg6[%c0_5, %c0_6] : memref<64x2048xf32, #tpu.memory_space<vmem>>, vector<64x2048xf32>
    %cst_7 = arith.constant dense<0.000000e+00> : vector<32x2048xf32>
    %5 = tpu.matmul %3, %4, %cst_7 {dimension_numbers = #tpu.dot_dimension_numbers<[1], [0], [0], [1], [0, 0, 1, 1], [], []>} : vector<32x64xf32>, vector<64x2048xf32>, vector<32x2048xf32> -> vector<32x2048xf32>
    %c0_8 = arith.constant 0 : index
    %c0_9 = arith.constant 0 : index
    %6 = vector.load %arg4[%c0_8, %c0_9] : memref<1x2048xf32, #tpu.memory_space<vmem>>, vector<1x2048xf32>
    %7 = vector.broadcast %6 : vector<1x2048xf32> to vector<32x2048xf32>
    %8 = arith.addf %2, %7 : vector<32x2048xf32>
    %9 = arith.mulf %8, %5 : vector<32x2048xf32>
    %c0_10 = arith.constant 0 : index
    %c0_11 = arith.constant 0 : index
    %10 = vector.load %arg7[%c0_10, %c0_11] : memref<32x2048xf32, #tpu.memory_space<vmem>>, vector<32x2048xf32>
    tpu.vector_store %arg7[%c0_10, %c0_11], %9 {strides = array<i32>} : memref<32x2048xf32, #tpu.memory_space<vmem>>, vector<32x2048xf32>,
    return
  }
  func.func @transform_0(%arg0: i32, %arg1: i32) -> (i32, i32) {
    %c0_i32 = arith.constant 0 : i32
    %c0_i32_0 = arith.constant 0 : i32
    return %arg1, %c0_i32 : i32, i32
  }
  func.func @transform_1(%arg0: i32, %arg1: i32) -> (i32, i32) {
    %c0_i32 = arith.constant 0 : i32
    %c0_i32_0 = arith.constant 0 : i32
    return %c0_i32, %arg0 : i32, i32
  }
  func.func @transform_2(%arg0: i32, %arg1: i32) -> (i32, i32) {
    %c0_i32 = arith.constant 0 : i32
    %c0_i32_0 = arith.constant 0 : i32
    return %c0_i32, %arg0 : i32, i32
  }
  func.func @transform_3(%arg0: i32, %arg1: i32) -> (i32, i32) {
    %c0_i32 = arith.constant 0 : i32
    return %arg1, %arg0 : i32, i32
  }
  func.func @transform_4(%arg0: i32, %arg1: i32) -> (i32, i32) {
    %c0_i32 = arith.constant 0 : i32
    %c0_i32_0 = arith.constant 0 : i32
    %c0_i32_1 = arith.constant 0 : i32
    return %c0_i32, %c0_i32_0 : i32, i32
  }
  func.func @transform_5(%arg0: i32, %arg1: i32) -> (i32, i32) {
    %c0_i32 = arith.constant 0 : i32
    return %arg1, %arg0 : i32, i32
  }
}

</mosaic_0001>

<bundles_post_ra>
// kernel: tpu_custom_call.1
= control target key start
LH: loop header
LB: loop body
LE: loop exit
PB: predicated region body
PF: predicated region fallthrough
CT: control target
= control target key end

     0   :  { %s4129_s0 = inlined_call_operand.hbm [shape: f32[64,64], index: 0, kind: input, shape index: {}]   ;;  %s4130_s1 = inlined_call_operand.hbm [shape: f32[64,2048], index: 1, kind: input, shape index: {}]   ;;  %s4131_s2 = inlined_call_operand.hbm [shape: f32[1,2048], index: 2, kind: input, shape index: {}]   ;;  %s4132_s3 = inlined_call_operand.hbm [shape: f32[64,64], index: 3, kind: input, shape index: {}]   ;;  %s4133_s4 = inlined_call_operand.hbm [shape: f32[64,2048], index: 4, kind: input, shape index: {}]   ;;  %s4134_s5 = inlined_call_operand.hbm [shape: f32[64,2048], index: 5, kind: output, shape index: {}]  }
   0x1   :  { %4145 = sst [smem:[#allocation38_spill]] %s4129_s0 }
   0x2   :  { %4146 = sst [smem:[#allocation39_spill]] %s4130_s1 }
   0x3   :  { %4147 = sst [smem:[#allocation40_spill]] %s4131_s2 }
   0x4   :  { %4148 = sst [smem:[#allocation41_spill]] %s4133_s4 }
   0x5   :  { %10 = vsyncpa [#allocation3], 0 }
   0x6   :  { %12 = vsyncpa [#allocation3 + $0x1], 0 }
   0x7   :  { %13 = vsyncpa [#allocation6], 0 }
   0x8   :  { %14 = vsyncpa [#allocation9], 0 }
   0x9   :  { %16 = vsyncpa [#allocation9 + $0x1], 0 }
   0xa   :  { %17 = vsyncpa [#allocation4], 0 }
   0xb   :  { %19 = vsyncpa [#allocation4 + $0x1], 0  ;;  %s3182_s18 = smov 0   ;;  %s3184_s19 = smov 0  }
   0xc   :  { %s3186_s20 = smov 0   ;;  %s3188_s21 = smov 0  }
   0xd   :  { %s3190_s22 = smov 0   ;;  %s3192_s23 = smov 0  }
   0xe LB: > { %s3213_s24 = sadd.s32 4294967295, %s3138_s23   ;;  %s2447_s25 = sadd.s32 4294967294, %s3138_s23   ;;  %s3138_s23 = sphi %s3192_s23, %s25_s23   ;;  %s3134_s22 = sphi %s3190_s22, %s4221_s22   ;;  %s3130_s21 = sphi %s3188_s21, %s4220_s21   ;;  %s3126_s20 = sphi %s3186_s20, %s4219_s20   ;;  %s3122_s19 = sphi %s3184_s19, %s4218_s19   ;;  %s3118_s18 = sphi %s3182_s18, %s4217_s18  }
   0xf   : > { %p57_p0 = scmp.ne.s32.totalorder %s3122_s19, %s3118_s18  ;;  %p4135_p1 = scmp.eq.s32.totalorder %s3213_s24, 0 }
  0x10   : > { %p190_p3 = scmp.eq.s32.totalorder %s2447_s25, 1  ;;  %p2448_p5 = scmp.ge.s32.totalorder %s3138_s23, 1 }
  0x11   : > { %p3222_p4 = por %p4135_p1, %p57_p0  ;;  %p197_p7 = scmp.lt.s32.totalorder %s3138_s23, 3 }
  0x12   : > { %p3227_p6 = por %p190_p3, %p57_p0  ;;  %s3140_s29 = smov [#allocation5]  }
  0x13   : > { %s4149_s26 = scalar_select %p3222_p4, 1, 0 }
  0x14   : > { %s4150_s27 = scalar_select %p3227_p6, 1, 0 }
  0x15   : > { %p3232_p8 = pnand %p2448_p5, %p197_p7  ;;  %s212_s30 = sshll.u32 %s3140_s29, 4  ;;  %s3236_s30 = int_to_ptr.vmem [resolvable:$true] %s212_s30 }
  0x16   : > { %4151 = sst [smem:[#allocation17_spill]] %s4150_s27  ;;  %s3141_s7 = smov [#allocation10]  }
  0x17   : > { %s4152_s28 = scalar_select %p3232_p8, 1, 0 }
  0x18   : > { %p2814_p9 = pneg %p3232_p8  ;;  %s239_s8 = sshll.u32 %s3141_s7, 4  ;;  %s3247_s8 = int_to_ptr.vmem [resolvable:$true] %s239_s8 }
  0x19   : > { %s3142_s9 = smov [#allocation7]   ;;  %s4154_s1 = sld [smem:[#allocation39_spill]] }
  0x1a   : > { %p3243_p11 = pnand %p2814_p9, %p4135_p1  ;;  %s3249_s10 = sshll.u32 %s3142_s9, 4  ;;  %s230_s10 = int_to_ptr.vmem [resolvable:$true] %s3249_s10 }
  0x1c   : > { %p3259_p13 = pneg %p3243_p11 }
  0x1f   : > { %s2900_s13 = scalar_lea.hbm %s4154_s1, 16384 }
  0x20   : > { %p2901_p12 = scmp.ne.s32.totalorder %s4154_s1, %s2900_s13  ;;  %p2907_p5 = scmp.lt.u32.totalorder %s2900_s13, %s4154_s1 }
  0x22   : > { %p2903_p0 = pnand %p3259_p13, %p2901_p12 }
  0x24   : > { %p2904_p3 = pneg %p2903_p0 }
  0x26   : > { %p2909_p7 = pnand %p2907_p5, %p2904_p3 }
  0x28   : > { %2912 = shalt.err (!%p2909_p7)
}
  0x29   : > { %s2913_s29 = scalar_lea.vmem %s3236_s30, 16384  ;;  %p2921_p2 = scmp.lt.s32.totalorder %s3236_s30, %s3236_s30 }
  0x2a   : > { %p2914_p9 = scmp.ne.s32.totalorder %s3236_s30, %s2913_s29  ;;  %p2922_p6 = scmp.lt.s32.totalorder %s2913_s29, %s2913_s29 }
  0x2c   : > { %p2916_p10 = pnand %p2914_p9, %p3259_p13  ;;  %p2923_p12 = por %p2922_p6, %p2921_p2 }
  0x2e   : > { %p2917_p1 = pneg %p2916_p10 }
  0x30   : > { %p2924_p0 = pnand %p2923_p12, %p2917_p1 }
  0x32   : > { %2927 = shalt.err (!%p2924_p0)
}
  0x33   : > { %s3143_s7 = smov 2048   ;;  %s4139_s9 = smov 128  }
  0x34   : > { %2817 = dma.hbm_to_vmem [thread:$0]  (!%p3243_p11), %s4154_s1, 16384, %s3236_s30, [#allocation6], %s3143_s7, %s3143_s7, %s4139_s9  }
  0x35   : > { %s4156_s4 = sld [smem:[#allocation41_spill]] }
  0x3b   : > { %s2928_s15 = scalar_lea.hbm %s4156_s4, 16384 }
  0x3c   : > { %p2929_p1 = scmp.ne.s32.totalorder %s4156_s4, %s2928_s15  ;;  %p2935_p10 = scmp.lt.u32.totalorder %s2928_s15, %s4156_s4 }
  0x3e   : > { %p2931_p2 = pnand %p2929_p1, %p3259_p13 }
  0x40   : > { %p2932_p6 = pneg %p2931_p2 }
  0x42   : > { %p2937_p3 = pnand %p2935_p10, %p2932_p6 }
  0x44   : > { %2940 = shalt.err (!%p2937_p3)
}
  0x45   : > { %s2941_s30 = scalar_lea.vmem %s3247_s8, 16384  ;;  %p2949_p12 = scmp.lt.s32.totalorder %s3247_s8, %s3247_s8 }
  0x46   : > { %p2942_p5 = scmp.ne.s32.totalorder %s3247_s8, %s2941_s30  ;;  %p2950_p0 = scmp.lt.s32.totalorder %s2941_s30, %s2941_s30 }
  0x48   : > { %p2944_p7 = pnand %p2942_p5, %p3259_p13  ;;  %p2951_p1 = por %p2950_p0, %p2949_p12 }
  0x4a   : > { %p2945_p9 = pneg %p2944_p7 }
  0x4c   : > { %p2952_p2 = pnand %p2951_p1, %p2945_p9 }
  0x4e   : > { %2955 = shalt.err (!%p2952_p2)
}
  0x4f   : > { %2823 = dma.hbm_to_vmem [thread:$0]  (!%p3243_p11), %s4156_s4, 16384, %s3247_s8, [#allocation9], %s3143_s7, %s3143_s7, %s4139_s9  }
  0x50   : > { %s4157_s2 = sld [smem:[#allocation40_spill]] }
  0x56   : > { %s2956_s14 = scalar_lea.hbm %s4157_s2, 256 }
  0x57   : > { %p2957_p6 = scmp.ne.s32.totalorder %s4157_s2, %s2956_s14  ;;  %p2963_p5 = scmp.lt.u32.totalorder %s2956_s14, %s4157_s2 }
  0x59   : > { %p2959_p10 = pnand %p2957_p6, %p3259_p13 }
  0x5b   : > { %p2960_p3 = pneg %p2959_p10 }
  0x5d   : > { %p2965_p7 = pnand %p2963_p5, %p2960_p3 }
  0x5f   : > { %2968 = shalt.err (!%p2965_p7)
}
  0x60   : > { %s2969_s30 = scalar_lea.vmem %s230_s10, 256  ;;  %p2977_p1 = scmp.lt.s32.totalorder %s230_s10, %s230_s10 }
  0x61   : > { %p2970_p9 = scmp.ne.s32.totalorder %s230_s10, %s2969_s30  ;;  %p2978_p2 = scmp.lt.s32.totalorder %s2969_s30, %s2969_s30 }
  0x63   : > { %p2972_p12 = pnand %p2970_p9, %p3259_p13  ;;  %p2979_p4 = por %p2978_p2, %p2977_p1 }
  0x65   : > { %p2973_p0 = pneg %p2972_p12 }
  0x67   : > { %p2980_p8 = pnand %p2979_p4, %p2973_p0 }
  0x69   : > { %2983 = shalt.err (!%p2980_p8)
}
  0x6a   : > { %2820 = dma.hbm_to_vmem [thread:$0]  (!%p3243_p11), %s4157_s2, 256, %s230_s10, [#allocation6]  }
  0x6b   : > { %s44_s16 = sadd.s32 1, %s3126_s20  ;;  %s34_s27 = sadd.s32 1, %s3134_s22 }
  0x6c   : > { %p51_p4 = scmp.ne.s32.totalorder %s3126_s20, %s3122_s19  ;;  %p35_p8 = scmp.ge.s32.totalorder %s34_s27, 2 }
  0x6d   : > { %p52_p13 = scmp.eq.s32.totalorder %s3138_s23, 0  ;;  %p4158_p6 = scmp.eq.s32.totalorder %s3213_s24, 1 }
  0x6e   : > { %p2838_p3 = scmp.lt.s32.totalorder %s3138_s23, 2  ;;  %s4223_s27 = smov (%p35_p8, %s34_s27), 0 }
  0x6f   : > { %p3331_p10 = por %p4158_p6, %p51_p4  ;;  %4160 = sst [smem:[#allocation18_spill]] %s4223_s27 }
  0x70   : > { %p53_p5 = por %p52_p13, %p51_p4  ;;  %s253_s11 = sand.u32 1, %s3126_s20  }
  0x71   : > { %s41_s12 = ssub.s32 %s3134_s22, %s4223_s27  ;;  %s3341_s10 = sshll.u32 %s253_s11, 5 }
  0x72   : > { %p42_p7 = scmp.eq.s32.totalorder %s41_s12, 0  ;;  %s2536_s13 = sshll.u32 %s3134_s22, 9 }
  0x73   : > { %s4161_s0 = sld [smem:[#allocation38_spill]]  ;;  %s257_s29 = scalar_lea.vmem [#allocation2], %s3341_s10 }
  0x74   : > { %s3345_s14 = scalar_select %p42_p7, %s3126_s20, %s44_s16  }
  0x75   : > { %s264_s30 = sshll.u32 %s257_s29, 4  ;;  %p3357_p11 = pnand %p2838_p3, %p53_p5  ;;  %s3353_s30 = int_to_ptr.vmem [resolvable:$true] %s264_s30 }
  0x76   : > { %s3364_s12 = scalar_lea.hbm %s4132_s3, %s2536_s13  ;;  %s3366_s15 = scalar_lea.sflag [#allocation3], %s253_s11 }
  0x77   : > { %p2986_p12 = pneg %p3357_p11 }
  0x79   : > { %s3350_s25 = scalar_lea.hbm %s4161_s0, %s2536_s13  ;;  %s2989_s1 = scalar_lea.hbm %s4161_s0, 1024 }
  0x7a   : > { %s2984_s17 = scalar_lea.hbm %s3350_s25, 512  ;;  %p2990_p2 = scmp.lt.u32.totalorder %s3350_s25, %s4161_s0 }
  0x7b   : > { %p2985_p9 = scmp.ne.s32.totalorder %s3350_s25, %s2984_s17  ;;  %p2991_p4 = scmp.lt.u32.totalorder %s2989_s1, %s2984_s17 }
  0x7c   : > { %p2993_p13 = scmp.lt.u32.totalorder %s2984_s17, %s3350_s25 }
  0x7d   : > { %p2987_p0 = pnand %p2986_p12, %p2985_p9  ;;  %p2992_p8 = por %p2991_p4, %p2990_p2 }
  0x7f   : > { %p2988_p1 = pneg %p2987_p0  ;;  %p2994_p6 = por %p2993_p13, %p2992_p8 }
  0x81   : > { %p2995_p3 = pnand %p2994_p6, %p2988_p1 }
  0x83   : > { %2998 = shalt.err (!%p2995_p3)
}
  0x84   : > { %s2999_s11 = scalar_lea.vmem %s3353_s30, 512  ;;  %s3145_s9 = smov [#allocation2]  }
  0x85   : > { %p3000_p5 = scmp.ne.s32.totalorder %s3353_s30, %s2999_s11  ;;  %s3004_s13 = sshll.u32 %s3145_s9, 4  ;;  %s3005_s13 = int_to_ptr.vmem [resolvable:$false] %s3004_s13 }
  0x86   : > { %s3006_s2 = scalar_lea.vmem %s3005_s13, 1024  ;;  %p3007_p0 = scmp.lt.s32.totalorder %s3353_s30, %s3005_s13 }
  0x87   : > { %p3002_p7 = pnand %p3000_p5, %p2986_p12  ;;  %p3008_p2 = scmp.lt.s32.totalorder %s3006_s2, %s2999_s11 }
  0x89   : > { %p3003_p9 = pneg %p3002_p7  ;;  %p3009_p4 = por %p3008_p2, %p3007_p0 }
  0x8b   : > { %p3010_p8 = pnand %p3009_p4, %p3003_p9 }
  0x8d   : > { %3013 = shalt.err (!%p3010_p8)
}
  0x8e   : > { %s3146_s1 = smov 8   ;;  %s4163_s16 = smov 128  }
  0x8f   : > { %2827 = dma.hbm_to_vmem [thread:$0]  (!%p3357_p11), %s3350_s25, 512, %s3353_s30, %s3366_s15, %s4163_s16, %s4163_s16, %s3146_s1  }
  0x90   : > { %s278_s17 = scalar_lea.vmem [#allocation8], %s3341_s10  ;;  %s274_s7 = sand.u32 1, %s3138_s23  }
  0x91   : > { %s286_s29 = sshll.u32 %s278_s17, 4  ;;  %s3401_s11 = scalar_lea.sflag [#allocation9], %s274_s7  ;;  %s3399_s29 = int_to_ptr.vmem [resolvable:$true] %s286_s29 }
  0x92   : > { %s3014_s9 = scalar_lea.hbm %s3364_s12, 512  ;;  %s3019_s0 = scalar_lea.hbm %s4132_s3, 1024 }
  0x93   : > { %p3015_p1 = scmp.ne.s32.totalorder %s3364_s12, %s3014_s9  ;;  %p3020_p3 = scmp.lt.u32.totalorder %s3364_s12, %s4132_s3 }
  0x94   : > { %p3021_p5 = scmp.lt.u32.totalorder %s3019_s0, %s3014_s9  ;;  %p3023_p9 = scmp.lt.u32.totalorder %s3014_s9, %s3364_s12 }
  0x95   : > { %p3017_p13 = pnand %p3015_p1, %p2986_p12 }
  0x96   : > { %p3022_p7 = por %p3021_p5, %p3020_p3 }
  0x97   : > { %p3018_p6 = pneg %p3017_p13 }
  0x98   : > { %p3024_p0 = por %p3023_p9, %p3022_p7 }
  0x9a   : > { %p3025_p2 = pnand %p3024_p0, %p3018_p6 }
  0x9c   : > { %3028 = shalt.err (!%p3025_p2)
}
  0x9d   : > { %s3029_s10 = scalar_lea.vmem %s3399_s29, 512  ;;  %s3147_s25 = smov [#allocation8]  }
  0x9e   : > { %p3030_p4 = scmp.ne.s32.totalorder %s3399_s29, %s3029_s10  ;;  %s3034_s30 = sshll.u32 %s3147_s25, 4  ;;  %s3035_s30 = int_to_ptr.vmem [resolvable:$false] %s3034_s30 }
  0x9f   : > { %s3036_s4 = scalar_lea.vmem %s3035_s30, 1024  ;;  %p3037_p13 = scmp.lt.s32.totalorder %s3399_s29, %s3035_s30 }
  0xa0   : > { %p3032_p8 = pnand %p3030_p4, %p2986_p12  ;;  %p3038_p3 = scmp.lt.s32.totalorder %s3036_s4, %s3029_s10 }
  0xa2   : > { %p3033_p1 = pneg %p3032_p8  ;;  %p3039_p5 = por %p3038_p3, %p3037_p13 }
  0xa4   : > { %p3040_p7 = pnand %p3039_p5, %p3033_p1 }
  0xa6   : > { %3043 = shalt.err (!%p3040_p7)
}
  0xa7   : > { %2830 = dma.hbm_to_vmem [thread:$0]  (!%p3357_p11), %s3364_s12, 512, %s3399_s29, %s3401_s11, %s4163_s16, %s4163_s16, %s3146_s1  }
  0xa8   : > { %p4164_p12 = scmp.ne.s32.totalorder %s4152_s28, 0 }
  0xaa   : > { %298 = sbr.rel (%p4164_p12) target bundleno = 567 (0x237), region = 40 }
  0xb1   : > { %s3433_s0 = sand.u32 1, %s3122_s19   ;;  %p4165_p6 = scmp.ne.s32.totalorder %s4149_s26, 0 }
  0xb2   : > { %s2460_s27 = sshll.u32 %s3433_s0, 5  ;;  %s301_s15 = scalar_lea.sflag [#allocation3], %s3433_s0 }
  0xb3   : > { %s3437_s17 = scalar_lea.vmem [#allocation2], %s2460_s27 }
  0xb4   : > { %3097 = dma.done.wait (%p4165_p6), %s301_s15, 512  }
  0xb5   : > { %3099 = vsyncadd (%p4165_p6), %s301_s15, 4294966784  ;;  %p4166_p11 = scmp.eq.s32.totalorder %s3213_s24, 0 }
  0xb7   : > { %3101 = dma.done.wait (%p4166_p11), [#allocation6], 16640   ;;  %p4167_p9 = pmov %p4166_p11 }
  0xb8   : > { %s317_s28 = sand.u32 1, %s3213_s24   ;;  %s3448_s12 = scalar_lea.vmem [#allocation8], %s2460_s27 }
  0xb9   : > { %3103 = vsyncadd (%p4167_p9), [#allocation6], 4294950656  ;;  %s318_s8 = scalar_lea.sflag [#allocation9], %s317_s28 }
  0xba   : > { %3105 = dma.done.wait (%p4165_p6), %s318_s8, 512  }
  0xbb   : > { %3107 = vsyncadd (%p4165_p6), %s318_s8, 4294966784  ;;  %p4168_p0 = pmov %p4167_p9 }
  0xbd   : > { %3109 = dma.done.wait (%p4168_p0), [#allocation9], 16384   ;;  %p4169_p2 = pmov %p4168_p0 }
  0xbe   : > { %v3148_v0 = vmov 0.0   ;;  %v500_v1 = vld [vmem:[#allocation10 + $0x8] sm:$0xff]  ;;  %v502_v3 = vld [vmem:[#allocation10 + $0x18] sm:$0xff]  ;;  %v499_v6 = vld [vmem:[#allocation10] sm:$0xff]  ;;  %vm627_vm0 = vcmask 523264   ;;  %s2465_s24 = sshll.u32 %s3433_s0, 9 }
  0xbf   : > { %3111 = vsyncadd (%p4169_p2), [#allocation9], 4294950912  ;;  %704 = vmatprep.mubr.f32.mxu0 %v3148_v0  ;;  %793 = vmatprep.mubr.f32.mxu1 %v3148_v0  ;;  %v516_v2 = vld [vmem:[#allocation10 + $0x88] sm:$0xff]  ;;  %v518_v5 = vld [vmem:[#allocation10 + $0x98] sm:$0xff]  ;;  %s3829_s26 = scalar_lea.vmem [#allocation11], %s2465_s24  ;;  %s2539_s1 = sshll.u32 %s3130_s21, 13 }
  0xc0   : > { %v2540_v4 = vpack.c.bf16 %v516_v2, %v500_v1  ;;  %v515_v7 = vld [vmem:[#allocation10 + $0x80] sm:$0xff]  ;;  %v2556_v8 = vpack.c.bf16 %v518_v5, %v502_v3  ;;  %v501_v10 = vld [vmem:[#allocation10 + $0x10] sm:$0xff]  ;;  %v532_v12 = vld [vmem:[#allocation10 + $0x108] sm:$0xff]  ;;  %s2305_s16 = sshll.u32 %s3829_s26, 4  ;;  %s4073_s7 = scalar_lea.hbm %s4134_s5, %s2539_s1  ;;  %s4075_s16 = int_to_ptr.vmem [resolvable:$true] %s2305_s16 }
  0xc1   : > { %v2542_v9 = vpack.c.bf16 %v515_v7, %v499_v6  ;;  %v517_v11 = vld [vmem:[#allocation10 + $0x90] sm:$0xff]  ;;  %v548_v14 = vld [vmem:[#allocation10 + $0x188] sm:$0xff]  ;;  %v534_v15 = vld [vmem:[#allocation10 + $0x118] sm:$0xff]  ;;  %s2289_s11 = scalar_lea.sflag [#allocation4], %s3433_s0  ;;  %s3044_s9 = scalar_lea.vmem %s4075_s16, 8192 }
  0xc2   : > { %2541 = vmatprep.subr.bf16.mxu0 %v2540_v4  ;;  %v2558_v13 = vpack.c.bf16 %v517_v11, %v501_v10  ;;  %v550_v16 = vld [vmem:[#allocation10 + $0x198] sm:$0xff]  ;;  %2557 = vmatprep.subr.bf16.mxu1 %v2556_v8  ;;  %v2544_v17 = vpack.c.bf16 %v548_v14, %v532_v12  ;;  %v531_v19 = vld [vmem:[#allocation10 + $0x100] sm:$0xff]  ;;  %v533_v21 = vld [vmem:[#allocation10 + $0x110] sm:$0xff]  ;;  %p3045_p4 = scmp.ne.s32.totalorder %s4075_s16, %s3044_s9  ;;  %s3149_s13 = smov [#allocation11]  }
  0xc3   : > { %2543 = vmatpush1.bf16.msra.mxu0 %v2542_v9  ;;  %v2560_v18 = vpack.c.bf16 %v550_v16, %v534_v15  ;;  %v547_v20 = vld [vmem:[#allocation10 + $0x180] sm:$0xff]  ;;  %v549_v23 = vld [vmem:[#allocation10 + $0x190] sm:$0xff]  ;;  %v564_v24 = vld [vmem:[#allocation10 + $0x208] sm:$0xff]  ;;  %s3048_s2 = sshll.u32 %s3149_s13, 4  ;;  %s3049_s2 = int_to_ptr.vmem [resolvable:$false] %s3048_s2 }
  0xc4   : > { %2559 = vmatpush1.bf16.msra.mxu1 %v2558_v13  ;;  %v2546_v22 = vpack.c.bf16 %v547_v20, %v531_v19  ;;  %v580_v25 = vld [vmem:[#allocation10 + $0x288] sm:$0xff]  ;;  %2545 = vmatprep.subr.bf16.mxu0 %v2544_v17  ;;  %v2562_v26 = vpack.c.bf16 %v549_v23, %v533_v21  ;;  %v566_v28 = vld [vmem:[#allocation10 + $0x218] sm:$0xff]  ;;  %v563_v30 = vld [vmem:[#allocation10 + $0x200] sm:$0xff]  ;;  %p3046_p8 = pnand %p3045_p4, %p3331_p10  ;;  %s3050_s10 = scalar_lea.vmem %s3049_s2, 16384 }
  0xc5   : > { %2561 = vmatprep.subr.bf16.mxu1 %v2560_v18  ;;  %v2548_v27 = vpack.c.bf16 %v580_v25, %v564_v24  ;;  %v582_v29 = vld [vmem:[#allocation10 + $0x298] sm:$0xff]  ;;  %v579_v32 = vld [vmem:[#allocation10 + $0x280] sm:$0xff]  ;;  %v565_v33 = vld [vmem:[#allocation10 + $0x210] sm:$0xff]  ;;  %p3051_p13 = scmp.lt.s32.totalorder %s4075_s16, %s3049_s2  ;;  %p3052_p3 = scmp.lt.s32.totalorder %s3050_s10, %s3044_s9 }
  0xc6   : > { %v2564_v31 = vpack.c.bf16 %v582_v29, %v566_v28  ;;  %v581_v34 = vld [vmem:[#allocation10 + $0x290] sm:$0xff]  ;;  %v2550_v35 = vpack.c.bf16 %v579_v32, %v563_v30  ;;  %v596_v36 = vld [vmem:[#allocation10 + $0x308] sm:$0xff]  ;;  %v598_v38 = vld [vmem:[#allocation10 + $0x318] sm:$0xff]  ;;  %p3047_p1 = pneg %p3046_p8 }
  0xc7   : > { %2547 = vmatpush1.bf16.msra.mxu0 %v2546_v22  ;;  %v612_v37 = vld [vmem:[#allocation10 + $0x388] sm:$0xff]  ;;  %v2566_v39 = vpack.c.bf16 %v581_v34, %v565_v33  ;;  %v614_v41 = vld [vmem:[#allocation10 + $0x398] sm:$0xff]  ;;  %v595_v42 = vld [vmem:[#allocation10 + $0x300] sm:$0xff]  ;;  %p3053_p5 = por %p3052_p3, %p3051_p13 }
  0xc8   : > { %2563 = vmatpush1.bf16.msra.mxu1 %v2562_v26  ;;  %2549 = vmatprep.subr.bf16.mxu0 %v2548_v27  ;;  %v2552_v40 = vpack.c.bf16 %v612_v37, %v596_v36  ;;  %v611_v43 = vld [vmem:[#allocation10 + $0x380] sm:$0xff]  ;;  %v2568_v44 = vpack.c.bf16 %v614_v41, %v598_v38  ;;  %v597_v45 = vld [vmem:[#allocation10 + $0x310] sm:$0xff]  ;;  %v504_v47 = vld [vmem:[#allocation10 + $0x28] sm:$0xff] }
  0xc9   : > { %2565 = vmatprep.subr.bf16.mxu1 %v2564_v31  ;;  %v613_v46 = vld [vmem:[#allocation10 + $0x390] sm:$0xff]  ;;  %v520_v48 = vld [vmem:[#allocation10 + $0xa8] sm:$0xff]  ;;  %v506_v49 = vld [vmem:[#allocation10 + $0x38] sm:$0xff]  ;;  %v2554_v50 = vpack.c.bf16 %v611_v43, %v595_v42  ;;  %p3054_p7 = pnand %p3053_p5, %p3047_p1 }
  0xca   : > { %v522_v51 = vld [vmem:[#allocation10 + $0xb8] sm:$0xff]  ;;  %v2570_v52 = vpack.c.bf16 %v613_v46, %v597_v45  ;;  %v2572_v53 = vpack.c.bf16 %v520_v48, %v504_v47  ;;  %v503_v54 = vld [vmem:[#allocation10 + $0x20] sm:$0xff]  ;;  %v505_v57 = vld [vmem:[#allocation10 + $0x30] sm:$0xff] }
  0xcb   : > { %2551 = vmatpush1.bf16.msra.mxu0 %v2550_v35  ;;  %v519_v55 = vld [vmem:[#allocation10 + $0xa0] sm:$0xff]  ;;  %v2588_v56 = vpack.c.bf16 %v522_v51, %v506_v49  ;;  %v521_v58 = vld [vmem:[#allocation10 + $0xb0] sm:$0xff]  ;;  %v536_v59 = vld [vmem:[#allocation10 + $0x128] sm:$0xff] }
  0xcc   : > { %2567 = vmatpush1.bf16.msra.mxu1 %v2566_v39  ;;  %2553 = vmatprep.subr.bf16.mxu0 %v2552_v40  ;;  %v552_v60 = vld [vmem:[#allocation10 + $0x1a8] sm:$0xff]  ;;  %v3461_v61 = vld [vmem:[%s3448_s12] sm:$0xff]  ;;  %v2574_v62 = vpack.c.bf16 %v519_v55, %v503_v54  ;;  %v538_v63 = vld [vmem:[#allocation10 + $0x138] sm:$0xff]  ;;  %v2590_v2 = vpack.c.bf16 %v521_v58, %v505_v57 }
  0xcd   : > { %2569 = vmatprep.subr.bf16.mxu1 %v2568_v44  ;;  %v554_v1 = vld [vmem:[#allocation10 + $0x1b8] sm:$0xff]  ;;  %v535_v3 = vld [vmem:[#allocation10 + $0x120] sm:$0xff]  ;;  %v2576_v5 = vpack.c.bf16 %v552_v60, %v536_v59  ;;  %v537_v6 = vld [vmem:[#allocation10 + $0x130] sm:$0xff] }
  0xce   : > { %v551_v4 = vld [vmem:[#allocation10 + $0x1a0] sm:$0xff]  ;;  %v553_v7 = vld [vmem:[#allocation10 + $0x1b0] sm:$0xff]  ;;  %v2592_v8 = vpack.c.bf16 %v554_v1, %v538_v63  ;;  %v568_v9 = vld [vmem:[#allocation10 + $0x228] sm:$0xff] }
  0xcf   : > { %2555 = vmatpush1.bf16.msra.mxu0 %v2554_v50  ;;  %v584_v10 = vld [vmem:[#allocation10 + $0x2a8] sm:$0xff]  ;;  %v2578_v12 = vpack.c.bf16 %v551_v4, %v535_v3  ;;  %v570_v13 = vld [vmem:[#allocation10 + $0x238] sm:$0xff]  ;;  %v2594_v15 = vpack.c.bf16 %v553_v7, %v537_v6  ;;  %v567_v16 = vld [vmem:[#allocation10 + $0x220] sm:$0xff] }
  0xd0   : > { %2571 = vmatpush1.bf16.msra.mxu1 %v2570_v52  ;;  %2573 = vmatprep.subr.bf16.mxu0 %v2572_v53  ;;  %v3468_v11 = vld [vmem:[%s3448_s12 + $0x8] sm:$0xff]  ;;  %v586_v14 = vld [vmem:[#allocation10 + $0x2b8] sm:$0xff]  ;;  %v583_v17 = vld [vmem:[#allocation10 + $0x2a0] sm:$0xff]  ;;  %v2580_v18 = vpack.c.bf16 %v584_v10, %v568_v9 }
  0xd1   : > { %2589 = vmatprep.subr.bf16.mxu1 %v2588_v56  ;;  %v569_v19 = vld [vmem:[#allocation10 + $0x230] sm:$0xff]  ;;  %v2596_v21 = vpack.c.bf16 %v586_v14, %v570_v13  ;;  %v600_v22 = vld [vmem:[#allocation10 + $0x328] sm:$0xff]  ;;  %v2582_v25 = vpack.c.bf16 %v583_v17, %v567_v16  ;;  %v602_v26 = vld [vmem:[#allocation10 + $0x338] sm:$0xff] }
  0xd2   : > { %2466 = vmatmul.mubr.msk.f32.vlgmr.msra.gmra.mrb[0].mxu0 %vm627_vm0, %v3461_v61  ;;  %v585_v20 = vld [vmem:[#allocation10 + $0x2b0] sm:$0xff]  ;;  %v616_v23 = vld [vmem:[#allocation10 + $0x3a8] sm:$0xff]  ;;  %v618_v27 = vld [vmem:[#allocation10 + $0x3b8] sm:$0xff] }
  0xd3   : > { %2470 = vmatmul.mubr.msk.f32.vlgmr.msra.gmra.mrb[0].mxu1 %vm627_vm0, %v3461_v61  ;;  %2575 = vmatpush1.bf16.msra.mxu0 %v2574_v62  ;;  %v3477_v24 = vld [vmem:[%s3448_s12 + $0x10] sm:$0xff]  ;;  %v2598_v28 = vpack.c.bf16 %v585_v20, %v569_v19  ;;  %v599_v29 = vld [vmem:[#allocation10 + $0x320] sm:$0xff]  ;;  %v2584_v31 = vpack.c.bf16 %v616_v23, %v600_v22  ;;  %v2600_v34 = vpack.c.bf16 %v618_v27, %v602_v26  ;;  %v508_v35 = vld [vmem:[#allocation10 + $0x48] sm:$0xff] }
  0xd4   : > { %2591 = vmatpush1.bf16.msra.mxu1 %v2590_v2  ;;  %710 = vmatprep.mubr.f32.mxu0 %v3148_v0  ;;  %v615_v30 = vld [vmem:[#allocation10 + $0x3a0] sm:$0xff]  ;;  %v601_v32 = vld [vmem:[#allocation10 + $0x330] sm:$0xff]  ;;  %v524_v36 = vld [vmem:[#allocation10 + $0xc8] sm:$0xff] }
  0xd5   : > { %799 = vmatprep.mubr.f32.mxu1 %v3148_v0  ;;  %2577 = vmatprep.subr.bf16.mxu0 %v2576_v5  ;;  %v617_v33 = vld [vmem:[#allocation10 + $0x3b0] sm:$0xff]  ;;  %v3486_v37 = vld [vmem:[%s3448_s12 + $0x18] sm:$0xff]  ;;  %v2586_v38 = vpack.c.bf16 %v615_v30, %v599_v29  ;;  %v507_v42 = vld [vmem:[#allocation10 + $0x40] sm:$0xff]  ;;  %v2604_v44 = vpack.c.bf16 %v524_v36, %v508_v35 }
  0xd6   : > { %2467 = vmatmul.mubr.msk.f32.gmra.mrb[2].mxu0 %vm627_vm0, %v3468_v11  ;;  %2593 = vmatprep.subr.bf16.mxu1 %v2592_v8  ;;  %v510_v39 = vld [vmem:[#allocation10 + $0x58] sm:$0xff]  ;;  %v2602_v41 = vpack.c.bf16 %v617_v33, %v601_v32  ;;  %v523_v43 = vld [vmem:[#allocation10 + $0xc0] sm:$0xff]  ;;  %v509_v45 = vld [vmem:[#allocation10 + $0x50] sm:$0xff] }
  0xd7   : > { %2471 = vmatmul.mubr.msk.f32.gmra.mrb[2].mxu1 %vm627_vm0, %v3468_v11  ;;  %2579 = vmatpush1.bf16.msra.mxu0 %v2578_v12  ;;  %v526_v40 = vld [vmem:[#allocation10 + $0xd8] sm:$0xff]  ;;  %v525_v46 = vld [vmem:[#allocation10 + $0xd0] sm:$0xff]  ;;  %v540_v48 = vld [vmem:[#allocation10 + $0x148] sm:$0xff]  ;;  %v2606_v50 = vpack.c.bf16 %v523_v43, %v507_v42 }
  0xd8   : > { %2595 = vmatpush1.bf16.msra.mxu1 %v2594_v15  ;;  %716 = vmatprep.mubr.f32.mxu0 %v3148_v0  ;;  %v2620_v47 = vpack.c.bf16 %v526_v40, %v510_v39  ;;  %v556_v49 = vld [vmem:[#allocation10 + $0x1c8] sm:$0xff]  ;;  %v542_v51 = vld [vmem:[#allocation10 + $0x158] sm:$0xff]  ;;  %v2622_v53 = vpack.c.bf16 %v525_v46, %v509_v45  ;;  %v539_v54 = vld [vmem:[#allocation10 + $0x140] sm:$0xff] }
  0xd9   : > { %805 = vmatprep.mubr.f32.mxu1 %v3148_v0  ;;  %2581 = vmatprep.subr.bf16.mxu0 %v2580_v18  ;;  %v558_v52 = vld [vmem:[#allocation10 + $0x1d8] sm:$0xff]  ;;  %v555_v55 = vld [vmem:[#allocation10 + $0x1c0] sm:$0xff]  ;;  %v2608_v56 = vpack.c.bf16 %v556_v49, %v540_v48  ;;  %v541_v57 = vld [vmem:[#allocation10 + $0x150] sm:$0xff] }
  0xda   : > { %2468 = vmatmul.mubr.msk.f32.gmra.mrb[4].mxu0 %vm627_vm0, %v3477_v24  ;;  %2597 = vmatprep.subr.bf16.mxu1 %v2596_v21  ;;  %v557_v58 = vld [vmem:[#allocation10 + $0x1d0] sm:$0xff]  ;;  %v2624_v59 = vpack.c.bf16 %v558_v52, %v542_v51  ;;  %v572_v60 = vld [vmem:[#allocation10 + $0x248] sm:$0xff]  ;;  %v2610_v63 = vpack.c.bf16 %v555_v55, %v539_v54  ;;  %v574_v1 = vld [vmem:[#allocation10 + $0x258] sm:$0xff] }
  0xdb   : > { %2472 = vmatmul.mubr.msk.f32.gmra.mrb[4].mxu1 %vm627_vm0, %v3477_v24  ;;  %2583 = vmatpush1.bf16.msra.mxu0 %v2582_v25  ;;  %v588_v62 = vld [vmem:[#allocation10 + $0x2c8] sm:$0xff]  ;;  %v590_v2 = vld [vmem:[#allocation10 + $0x2d8] sm:$0xff]  ;;  %v2626_v3 = vpack.c.bf16 %v557_v58, %v541_v57  ;;  %v571_v4 = vld [vmem:[#allocation10 + $0x240] sm:$0xff] }
  0xdc   : > { %2599 = vmatpush1.bf16.msra.mxu1 %v2598_v28  ;;  %722 = vmatprep.mubr.f32.mxu0 %v3148_v0  ;;  %v587_v5 = vld [vmem:[#allocation10 + $0x2c0] sm:$0xff]  ;;  %v2612_v6 = vpack.c.bf16 %v588_v62, %v572_v60  ;;  %v573_v7 = vld [vmem:[#allocation10 + $0x250] sm:$0xff]  ;;  %v2628_v9 = vpack.c.bf16 %v590_v2, %v574_v1  ;;  %v604_v10 = vld [vmem:[#allocation10 + $0x348] sm:$0xff] }
  0xdd   : > { %811 = vmatprep.mubr.f32.mxu1 %v3148_v0  ;;  %2585 = vmatprep.subr.bf16.mxu0 %v2584_v31  ;;  %v589_v8 = vld [vmem:[#allocation10 + $0x2d0] sm:$0xff]  ;;  %v620_v12 = vld [vmem:[#allocation10 + $0x3c8] sm:$0xff]  ;;  %v2614_v13 = vpack.c.bf16 %v587_v5, %v571_v4  ;;  %v606_v14 = vld [vmem:[#allocation10 + $0x358] sm:$0xff] }
  0xde   : > { %2469 = vmatmul.mubr.msk.f32.gmra.mrb[6].mxu0 %vm627_vm0, %v3486_v37  ;;  %2601 = vmatprep.subr.bf16.mxu1 %v2600_v34  ;;  %v622_v15 = vld [vmem:[#allocation10 + $0x3d8] sm:$0xff]  ;;  %v2630_v16 = vpack.c.bf16 %v589_v8, %v573_v7  ;;  %v603_v17 = vld [vmem:[#allocation10 + $0x340] sm:$0xff]  ;;  %v2616_v19 = vpack.c.bf16 %v620_v12, %v604_v10  ;;  %v605_v20 = vld [vmem:[#allocation10 + $0x350] sm:$0xff] }
  0xdf   : > { %2473 = vmatmul.mubr.msk.f32.gmra.mrb[6].mxu1 %vm627_vm0, %v3486_v37  ;;  %2587 = vmatpush1.bf16.msra.mxu0 %v2586_v38  ;;  %v619_v18 = vld [vmem:[#allocation10 + $0x3c0] sm:$0xff]  ;;  %v621_v21 = vld [vmem:[#allocation10 + $0x3d0] sm:$0xff]  ;;  %v2632_v22 = vpack.c.bf16 %v622_v15, %v606_v14  ;;  %v512_v23 = vld [vmem:[#allocation10 + $0x68] sm:$0xff] }
  0xe0   : > { %2603 = vmatpush1.bf16.msra.mxu1 %v2602_v41  ;;  %882 = vmatprep.mubr.f32.mxu0 %v3148_v0  ;;  %v528_v25 = vld [vmem:[#allocation10 + $0xe8] sm:$0xff]  ;;  %v2618_v26 = vpack.c.bf16 %v619_v18, %v603_v17  ;;  %v514_v27 = vld [vmem:[#allocation10 + $0x78] sm:$0xff]  ;;  %v2634_v29 = vpack.c.bf16 %v621_v21, %v605_v20  ;;  %v511_v30 = vld [vmem:[#allocation10 + $0x60] sm:$0xff] }
  0xe1   : > { %971 = vmatprep.mubr.f32.mxu1 %v3148_v0  ;;  %2605 = vmatprep.subr.bf16.mxu0 %v2604_v44  ;;  %v530_v28 = vld [vmem:[#allocation10 + $0xf8] sm:$0xff]  ;;  %v527_v31 = vld [vmem:[#allocation10 + $0xe0] sm:$0xff]  ;;  %v2636_v32 = vpack.c.bf16 %v528_v25, %v512_v23  ;;  %v513_v33 = vld [vmem:[#allocation10 + $0x70] sm:$0xff] }
  0xe2   : > { %2474 = vmatmul.mubr.msk.f32.vlgmr.msra.gmra.mrb[8].mxu0 %vm627_vm0, %v3461_v61  ;;  %2621 = vmatprep.subr.bf16.mxu1 %v2620_v47  ;;  %v529_v34 = vld [vmem:[#allocation10 + $0xf0] sm:$0xff]  ;;  %v2652_v35 = vpack.c.bf16 %v530_v28, %v514_v27  ;;  %v544_v36 = vld [vmem:[#allocation10 + $0x168] sm:$0xff]  ;;  %v2638_v39 = vpack.c.bf16 %v527_v31, %v511_v30  ;;  %v546_v40 = vld [vmem:[#allocation10 + $0x178] sm:$0xff] }
  0xe3   : > { %2478 = vmatmul.mubr.msk.f32.vlgmr.msra.gmra.mrb[8].mxu1 %vm627_vm0, %v3461_v61  ;;  %2607 = vmatpush1.bf16.msra.mxu0 %v2606_v50  ;;  %v560_v38 = vld [vmem:[#allocation10 + $0x1e8] sm:$0xff]  ;;  %v562_v41 = vld [vmem:[#allocation10 + $0x1f8] sm:$0xff]  ;;  %v2654_v42 = vpack.c.bf16 %v529_v34, %v513_v33  ;;  %v543_v43 = vld [vmem:[#allocation10 + $0x160] sm:$0xff] }
  0xe4   : > { %2623 = vmatpush1.bf16.msra.mxu1 %v2622_v53  ;;  %888 = vmatprep.mubr.f32.mxu0 %v3148_v0  ;;  %v559_v44 = vld [vmem:[#allocation10 + $0x1e0] sm:$0xff]  ;;  %v2640_v45 = vpack.c.bf16 %v560_v38, %v544_v36  ;;  %v545_v46 = vld [vmem:[#allocation10 + $0x170] sm:$0xff]  ;;  %v2656_v48 = vpack.c.bf16 %v562_v41, %v546_v40  ;;  %v576_v49 = vld [vmem:[#allocation10 + $0x268] sm:$0xff] }
  0xe5   : > { %977 = vmatprep.mubr.f32.mxu1 %v3148_v0  ;;  %2609 = vmatprep.subr.bf16.mxu0 %v2608_v56  ;;  %v561_v47 = vld [vmem:[#allocation10 + $0x1f0] sm:$0xff]  ;;  %v592_v50 = vld [vmem:[#allocation10 + $0x2e8] sm:$0xff]  ;;  %v2642_v51 = vpack.c.bf16 %v559_v44, %v543_v43  ;;  %v578_v52 = vld [vmem:[#allocation10 + $0x278] sm:$0xff] }
  0xe6   : > { %2475 = vmatmul.mubr.msk.f32.gmra.mrb[10].mxu0 %vm627_vm0, %v3468_v11  ;;  %2625 = vmatprep.subr.bf16.mxu1 %v2624_v59  ;;  %v594_v53 = vld [vmem:[#allocation10 + $0x2f8] sm:$0xff]  ;;  %v2658_v54 = vpack.c.bf16 %v561_v47, %v545_v46  ;;  %v575_v55 = vld [vmem:[#allocation10 + $0x260] sm:$0xff]  ;;  %v2644_v57 = vpack.c.bf16 %v592_v50, %v576_v49  ;;  %v577_v58 = vld [vmem:[#allocation10 + $0x270] sm:$0xff] }
  0xe7   : > { %2479 = vmatmul.mubr.msk.f32.gmra.mrb[10].mxu1 %vm627_vm0, %v3468_v11  ;;  %2611 = vmatpush1.bf16.msra.mxu0 %v2610_v63  ;;  %v591_v56 = vld [vmem:[#allocation10 + $0x2e0] sm:$0xff]  ;;  %v593_v59 = vld [vmem:[#allocation10 + $0x2f0] sm:$0xff]  ;;  %v2660_v60 = vpack.c.bf16 %v594_v53, %v578_v52  ;;  %v608_v62 = vld [vmem:[#allocation10 + $0x368] sm:$0xff] }
  0xe8   : > { %2627 = vmatpush1.bf16.msra.mxu1 %v2626_v3  ;;  %894 = vmatprep.mubr.f32.mxu0 %v3148_v0  ;;  %v624_v63 = vld [vmem:[#allocation10 + $0x3e8] sm:$0xff]  ;;  %v2646_v1 = vpack.c.bf16 %v591_v56, %v575_v55  ;;  %v610_v2 = vld [vmem:[#allocation10 + $0x378] sm:$0xff]  ;;  %v2662_v4 = vpack.c.bf16 %v593_v59, %v577_v58  ;;  %v607_v5 = vld [vmem:[#allocation10 + $0x360] sm:$0xff] }
  0xe9   : > { %983 = vmatprep.mubr.f32.mxu1 %v3148_v0  ;;  %2613 = vmatprep.subr.bf16.mxu0 %v2612_v6  ;;  %v626_v3 = vld [vmem:[#allocation10 + $0x3f8] sm:$0xff]  ;;  %v623_v6 = vld [vmem:[#allocation10 + $0x3e0] sm:$0xff]  ;;  %v2648_v7 = vpack.c.bf16 %v624_v63, %v608_v62  ;;  %v609_v8 = vld [vmem:[#allocation10 + $0x370] sm:$0xff] }
  0xea   : > { %2476 = vmatmul.mubr.msk.f32.gmra.mrb[12].mxu0 %vm627_vm0, %v3477_v24  ;;  %2629 = vmatprep.subr.bf16.mxu1 %v2628_v9  ;;  %v625_v9 = vld [vmem:[#allocation10 + $0x3f0] sm:$0xff]  ;;  %v2664_v10 = vpack.c.bf16 %v626_v3, %v610_v2  ;;  %v368_v12 = vld [vmem:[#allocation5 + $0x8] sm:$0xff]  ;;  %v2650_v14 = vpack.c.bf16 %v623_v6, %v607_v5  ;;  %v370_v15 = vld [vmem:[#allocation5 + $0x18] sm:$0xff] }
  0xeb   : > { %2480 = vmatmul.mubr.msk.f32.gmra.mrb[12].mxu1 %vm627_vm0, %v3477_v24  ;;  %2615 = vmatpush1.bf16.msra.mxu0 %v2614_v13  ;;  %v384_v13 = vld [vmem:[#allocation5 + $0x88] sm:$0xff]  ;;  %v2666_v17 = vpack.c.bf16 %v625_v9, %v609_v8  ;;  %v367_v18 = vld [vmem:[#allocation5] sm:$0xff]  ;;  %v369_v21 = vld [vmem:[#allocation5 + $0x10] sm:$0xff] }
  0xec   : > { %2631 = vmatpush1.bf16.msra.mxu1 %v2630_v16  ;;  %900 = vmatprep.mubr.f32.mxu0 %v3148_v0  ;;  %v386_v16 = vld [vmem:[#allocation5 + $0x98] sm:$0xff]  ;;  %v2668_v20 = vpack.c.bf16 %v384_v13, %v368_v12  ;;  %v400_v25 = vld [vmem:[#allocation5 + $0x108] sm:$0xff]  ;;  %v399_v31 = vld [vmem:[#allocation5 + $0x100] sm:$0xff] }
  0xed   : > { %989 = vmatprep.mubr.f32.mxu1 %v3148_v0  ;;  %2617 = vmatprep.subr.bf16.mxu0 %v2616_v19  ;;  %v383_v19 = vld [vmem:[#allocation5 + $0x80] sm:$0xff]  ;;  %v2684_v23 = vpack.c.bf16 %v386_v16, %v370_v15  ;;  %v402_v28 = vld [vmem:[#allocation5 + $0x118] sm:$0xff]  ;;  %v401_v34 = vld [vmem:[#allocation5 + $0x110] sm:$0xff] }
  0xee   : > { %2477 = vmatmul.mubr.msk.f32.gmra.mrb[14].mxu0 %vm627_vm0, %v3486_v37  ;;  %2633 = vmatprep.subr.bf16.mxu1 %v2632_v22  ;;  %v385_v22 = vld [vmem:[#allocation5 + $0x90] sm:$0xff]  ;;  %v2670_v27 = vpack.c.bf16 %v383_v19, %v367_v18  ;;  %v432_v38 = vld [vmem:[#allocation5 + $0x208] sm:$0xff]  ;;  %v434_v41 = vld [vmem:[#allocation5 + $0x218] sm:$0xff] }
  0xef   : > { %2481 = vmatmul.mubr.msk.f32.gmra.mrb[14].mxu1 %vm627_vm0, %v3486_v37  ;;  %2619 = vmatpush1.bf16.msra.mxu0 %v2618_v26  ;;  %v416_v26 = vld [vmem:[#allocation5 + $0x188] sm:$0xff]  ;;  %v2686_v30 = vpack.c.bf16 %v385_v22, %v369_v21  ;;  %v431_v44 = vld [vmem:[#allocation5 + $0x200] sm:$0xff]  ;;  %v433_v47 = vld [vmem:[#allocation5 + $0x210] sm:$0xff] }
  0xf0   : > { %2635 = vmatpush1.bf16.msra.mxu1 %v2634_v29  ;;  %1060 = vmatprep.mubr.f32.mxu0 %v3148_v0  ;;  %v418_v29 = vld [vmem:[#allocation5 + $0x198] sm:$0xff]  ;;  %v2672_v33 = vpack.c.bf16 %v416_v26, %v400_v25  ;;  %v464_v49 = vld [vmem:[#allocation5 + $0x308] sm:$0xff]  ;;  %v463_v55 = vld [vmem:[#allocation5 + $0x300] sm:$0xff] }
  0xf1   : > { %1149 = vmatprep.mubr.f32.mxu1 %v3148_v0  ;;  %2637 = vmatprep.subr.bf16.mxu0 %v2636_v32  ;;  %v415_v32 = vld [vmem:[#allocation5 + $0x180] sm:$0xff]  ;;  %v2688_v36 = vpack.c.bf16 %v418_v29, %v402_v28  ;;  %v480_v50 = vld [vmem:[#allocation5 + $0x388] sm:$0xff]  ;;  %v466_v52 = vld [vmem:[#allocation5 + $0x318] sm:$0xff] }
  0xf2   : > { %2482 = vmatmul.mubr.msk.f32.vlgmr.msra.gmra.mrb[16].mxu0 %vm627_vm0, %v3461_v61  ;;  %2653 = vmatprep.subr.bf16.mxu1 %v2652_v35  ;;  %v417_v35 = vld [vmem:[#allocation5 + $0x190] sm:$0xff]  ;;  %v2674_v40 = vpack.c.bf16 %v415_v32, %v399_v31  ;;  %v482_v53 = vld [vmem:[#allocation5 + $0x398] sm:$0xff]  ;;  %v479_v56 = vld [vmem:[#allocation5 + $0x380] sm:$0xff] }
  0xf3   : > { %2486 = vmatmul.mubr.msk.f32.vlgmr.msra.gmra.mrb[16].mxu1 %vm627_vm0, %v3461_v61  ;;  %2639 = vmatpush1.bf16.msra.mxu0 %v2638_v39  ;;  %v448_v39 = vld [vmem:[#allocation5 + $0x288] sm:$0xff]  ;;  %v2690_v43 = vpack.c.bf16 %v417_v35, %v401_v34  ;;  %v465_v58 = vld [vmem:[#allocation5 + $0x310] sm:$0xff]  ;;  %v2682_v63 = vpack.c.bf16 %v479_v56, %v463_v55  ;;  %v390_v2 = vld [vmem:[#allocation5 + $0xb8] sm:$0xff] }
  0xf4   : > { %2655 = vmatpush1.bf16.msra.mxu1 %v2654_v42  ;;  %1066 = vmatprep.mubr.f32.mxu0 %v3148_v0  ;;  %v450_v42 = vld [vmem:[#allocation5 + $0x298] sm:$0xff]  ;;  %v2676_v46 = vpack.c.bf16 %v448_v39, %v432_v38  ;;  %v481_v59 = vld [vmem:[#allocation5 + $0x390] sm:$0xff]  ;;  %v388_v62 = vld [vmem:[#allocation5 + $0xa8] sm:$0xff] }
  0xf5   : > { %1155 = vmatprep.mubr.f32.mxu1 %v3148_v0  ;;  %2641 = vmatprep.subr.bf16.mxu0 %v2640_v45  ;;  %v447_v45 = vld [vmem:[#allocation5 + $0x280] sm:$0xff]  ;;  %v2698_v3 = vpack.c.bf16 %v481_v59, %v465_v58  ;;  %v389_v8 = vld [vmem:[#allocation5 + $0xb0] sm:$0xff]  ;;  %v404_v9 = vld [vmem:[#allocation5 + $0x128] sm:$0xff] }
  0xf6   : > { %2483 = vmatmul.mubr.msk.f32.gmra.mrb[18].mxu0 %vm627_vm0, %v3468_v11  ;;  %2657 = vmatprep.subr.bf16.mxu1 %v2656_v48  ;;  %v449_v48 = vld [vmem:[#allocation5 + $0x290] sm:$0xff]  ;;  %v387_v5 = vld [vmem:[#allocation5 + $0xa0] sm:$0xff]  ;;  %v422_v15 = vld [vmem:[#allocation5 + $0x1b8] sm:$0xff] }
  0xf7   : > { %2487 = vmatmul.mubr.msk.f32.gmra.mrb[18].mxu1 %vm627_vm0, %v3468_v11  ;;  %2643 = vmatpush1.bf16.msra.mxu0 %v2642_v51  ;;  %v2678_v51 = vpack.c.bf16 %v447_v45, %v431_v44  ;;  %v3567_v12 = vld [vmem:[%s3437_s17] sm:$0xff]  ;;  %v421_v21 = vld [vmem:[#allocation5 + $0x1b0] sm:$0xff]  ;;  %v436_v22 = vld [vmem:[#allocation5 + $0x228] sm:$0xff] }
  0xf8   : > { %2659 = vmatpush1.bf16.msra.mxu1 %v2658_v54  ;;  %1072 = vmatprep.mubr.f32.mxu0 %v3148_v0  ;;  %v2694_v54 = vpack.c.bf16 %v449_v48, %v433_v47  ;;  %v419_v18 = vld [vmem:[#allocation5 + $0x1a0] sm:$0xff]  ;;  %v3576_v25 = vld [vmem:[%s3437_s17 + $0x8] sm:$0xff]  ;;  %v454_v28 = vld [vmem:[#allocation5 + $0x2b8] sm:$0xff] }
  0xf9   : > { %1161 = vmatprep.mubr.f32.mxu1 %v3148_v0  ;;  %2645 = vmatprep.subr.bf16.mxu0 %v2644_v57  ;;  %v2680_v57 = vpack.c.bf16 %v480_v50, %v464_v49  ;;  %v451_v31 = vld [vmem:[#allocation5 + $0x2a0] sm:$0xff]  ;;  %v453_v34 = vld [vmem:[#allocation5 + $0x2b0] sm:$0xff]  ;;  %v484_v38 = vld [vmem:[#allocation5 + $0x3a8] sm:$0xff] }
  0xfa   : > { %2484 = vmatmul.mubr.msk.f32.gmra.mrb[20].mxu0 %vm627_vm0, %v3477_v24  ;;  %2661 = vmatprep.subr.bf16.mxu1 %v2660_v60  ;;  %v372_v60 = vld [vmem:[#allocation5 + $0x28] sm:$0xff]  ;;  %v3585_v39 = vld [vmem:[%s3437_s17 + $0x10] sm:$0xff]  ;;  %v467_v44 = vld [vmem:[#allocation5 + $0x320] sm:$0xff] }
  0xfb   : > { %2488 = vmatmul.mubr.msk.f32.gmra.mrb[20].mxu1 %vm627_vm0, %v3477_v24  ;;  %2647 = vmatpush1.bf16.msra.mxu0 %v2646_v1  ;;  %v374_v1 = vld [vmem:[#allocation5 + $0x38] sm:$0xff]  ;;  %v2700_v6 = vpack.c.bf16 %v388_v62, %v372_v60  ;;  %v483_v45 = vld [vmem:[#allocation5 + $0x3a0] sm:$0xff]  ;;  %v469_v47 = vld [vmem:[#allocation5 + $0x330] sm:$0xff] }
  0xfc   : > { %2663 = vmatpush1.bf16.msra.mxu1 %v2662_v4  ;;  %1078 = vmatprep.mubr.f32.mxu0 %v3148_v0  ;;  %v371_v4 = vld [vmem:[#allocation5 + $0x20] sm:$0xff]  ;;  %v485_v48 = vld [vmem:[#allocation5 + $0x3b0] sm:$0xff]  ;;  %v376_v49 = vld [vmem:[#allocation5 + $0x48] sm:$0xff] }
  0xfd   : > { %1167 = vmatprep.mubr.f32.mxu1 %v3148_v0  ;;  %2649 = vmatprep.subr.bf16.mxu0 %v2648_v7  ;;  %v373_v7 = vld [vmem:[#allocation5 + $0x30] sm:$0xff]  ;;  %v2702_v13 = vpack.c.bf16 %v387_v5, %v371_v4  ;;  %v392_v50 = vld [vmem:[#allocation5 + $0xc8] sm:$0xff]  ;;  %v2730_v55 = vpack.c.bf16 %v485_v48, %v469_v47  ;;  %v375_v56 = vld [vmem:[#allocation5 + $0x40] sm:$0xff] }
  0xfe   : > { %2485 = vmatmul.mubr.msk.f32.gmra.mrb[22].mxu0 %vm627_vm0, %v3486_v37  ;;  %2665 = vmatprep.subr.bf16.mxu1 %v2664_v10  ;;  %v420_v10 = vld [vmem:[#allocation5 + $0x1a8] sm:$0xff]  ;;  %v2718_v16 = vpack.c.bf16 %v389_v8, %v373_v7  ;;  %v2732_v58 = vpack.c.bf16 %v392_v50, %v376_v49  ;;  %v377_v59 = vld [vmem:[#allocation5 + $0x50] sm:$0xff]  ;;  %v407_v5 = vld [vmem:[#allocation5 + $0x140] sm:$0xff] }
  0xff   : > { %2489 = vmatmul.mubr.msk.f32.gmra.mrb[22].mxu1 %vm627_vm0, %v3486_v37  ;;  %2651 = vmatpush1.bf16.msra.mxu0 %v2650_v14  ;;  %v406_v14 = vld [vmem:[#allocation5 + $0x138] sm:$0xff]  ;;  %v2704_v19 = vpack.c.bf16 %v420_v10, %v404_v9  ;;  %v408_v62 = vld [vmem:[#allocation5 + $0x148] sm:$0xff]  ;;  %v409_v8 = vld [vmem:[#allocation5 + $0x150] sm:$0xff] }
 0x100   : > { %2667 = vmatpush1.bf16.msra.mxu1 %v2666_v17  ;;  %1238 = vmatprep.mubr.f32.mxu0 %v3148_v0  ;;  %v403_v17 = vld [vmem:[#allocation5 + $0x120] sm:$0xff]  ;;  %v440_v10 = vld [vmem:[#allocation5 + $0x248] sm:$0xff]  ;;  %v381_v48 = vld [vmem:[#allocation5 + $0x70] sm:$0xff] }
 0x101   : > { %1327 = vmatprep.mubr.f32.mxu1 %v3148_v0  ;;  %2669 = vmatprep.subr.bf16.mxu0 %v2668_v20  ;;  %v405_v20 = vld [vmem:[#allocation5 + $0x130] sm:$0xff]  ;;  %v2706_v26 = vpack.c.bf16 %v419_v18, %v403_v17  ;;  %v439_v18 = vld [vmem:[#allocation5 + $0x240] sm:$0xff]  ;;  %v412_v50 = vld [vmem:[#allocation5 + $0x168] sm:$0xff] }
 0x102   : > { %2490 = vmatmul.mubr.msk.f32.vlgmr.msra.gmra.mrb[24].mxu0 %vm627_vm0, %v3461_v61  ;;  %2685 = vmatprep.subr.bf16.mxu1 %v2684_v23  ;;  %v452_v23 = vld [vmem:[#allocation5 + $0x2a8] sm:$0xff]  ;;  %v2722_v29 = vpack.c.bf16 %v421_v21, %v405_v20  ;;  %v441_v21 = vld [vmem:[#allocation5 + $0x250] sm:$0xff] }
 0x103   : > { %2494 = vmatmul.mubr.msk.f32.vlgmr.msra.gmra.mrb[24].mxu1 %vm627_vm0, %v3461_v61  ;;  %2671 = vmatpush1.bf16.msra.mxu0 %v2670_v27  ;;  %v2692_v61 = vpack.c.bf16 %v450_v42, %v434_v41  ;;  %v438_v27 = vld [vmem:[#allocation5 + $0x238] sm:$0xff]  ;;  %v2708_v32 = vpack.c.bf16 %v452_v23, %v436_v22  ;;  %v472_v23 = vld [vmem:[#allocation5 + $0x348] sm:$0xff] }
 0x104   : > { %2687 = vmatpush1.bf16.msra.mxu1 %v2686_v30  ;;  %1244 = vmatprep.mubr.f32.mxu0 %v3148_v0  ;;  %v435_v30 = vld [vmem:[#allocation5 + $0x220] sm:$0xff]  ;;  %v2724_v35 = vpack.c.bf16 %v454_v28, %v438_v27  ;;  %v470_v41 = vld [vmem:[#allocation5 + $0x338] sm:$0xff] }
 0x105   : > { %1333 = vmatprep.mubr.f32.mxu1 %v3148_v0  ;;  %2673 = vmatprep.subr.bf16.mxu0 %v2672_v33  ;;  %v437_v33 = vld [vmem:[#allocation5 + $0x230] sm:$0xff]  ;;  %v486_v42 = vld [vmem:[#allocation5 + $0x3b8] sm:$0xff] }
 0x106   : > { %2491 = vmatmul.mubr.msk.f32.gmra.mrb[26].mxu0 %vm627_vm0, %v3468_v11  ;;  %2689 = vmatprep.subr.bf16.mxu1 %v2688_v36  ;;  %v468_v36 = vld [vmem:[#allocation5 + $0x328] sm:$0xff]  ;;  %v474_v28 = vld [vmem:[#allocation5 + $0x358] sm:$0xff] }
 0x107   : > { %2495 = vmatmul.mubr.msk.f32.gmra.mrb[26].mxu1 %vm627_vm0, %v3468_v11  ;;  %2675 = vmatpush1.bf16.msra.mxu0 %v2674_v40  ;;  %v2696_v11 = vpack.c.bf16 %v482_v53, %v466_v52  ;;  %v2710_v40 = vpack.c.bf16 %v451_v31, %v435_v30  ;;  %v2714_v52 = vpack.c.bf16 %v483_v45, %v467_v44  ;;  %v378_v53 = vld [vmem:[#allocation5 + $0x58] sm:$0xff]  ;;  %v471_v31 = vld [vmem:[#allocation5 + $0x340] sm:$0xff] }
 0x108   : > { %2691 = vmatpush1.bf16.msra.mxu1 %v2690_v43  ;;  %1250 = vmatprep.mubr.f32.mxu0 %v3148_v0  ;;  %v2726_v43 = vpack.c.bf16 %v453_v34, %v437_v33  ;;  %v473_v34 = vld [vmem:[#allocation5 + $0x350] sm:$0xff]  ;;  %v379_v45 = vld [vmem:[#allocation5 + $0x60] sm:$0xff] }
 0x109   : > { %1339 = vmatprep.mubr.f32.mxu1 %v3148_v0  ;;  %2677 = vmatprep.subr.bf16.mxu0 %v2676_v46  ;;  %v2712_v46 = vpack.c.bf16 %v484_v38, %v468_v36  ;;  %v380_v38 = vld [vmem:[#allocation5 + $0x68] sm:$0xff] }
 0x10a   : > { %2492 = vmatmul.mubr.msk.f32.gmra.mrb[28].mxu0 %vm627_vm0, %v3477_v24  ;;  %2693 = vmatprep.subr.bf16.mxu1 %v2692_v61  ;;  %v2728_v61 = vpack.c.bf16 %v486_v42, %v470_v41  ;;  %v382_v42 = vld [vmem:[#allocation5 + $0x78] sm:$0xff] }
 0x10b   : > { %2496 = vmatmul.mubr.msk.f32.gmra.mrb[28].mxu1 %vm627_vm0, %v3477_v24  ;;  %2679 = vmatpush1.bf16.msra.mxu0 %v2678_v51  ;;  %v2716_v24 = vpack.c.bf16 %v390_v2, %v374_v1  ;;  %v3594_v51 = vld [vmem:[%s3437_s17 + $0x18] sm:$0xff] }
 0x10c   : > { %2695 = vmatpush1.bf16.msra.mxu1 %v2694_v54  ;;  %1256 = vmatprep.mubr.f32.mxu0 %v3148_v0  ;;  %v394_v54 = vld [vmem:[#allocation5 + $0xd8] sm:$0xff] }
 0x10d   : > { %1345 = vmatprep.mubr.f32.mxu1 %v3148_v0  ;;  %2681 = vmatprep.subr.bf16.mxu0 %v2680_v57  ;;  %v391_v57 = vld [vmem:[#allocation5 + $0xc0] sm:$0xff]  ;;  %v2748_v60 = vpack.c.bf16 %v394_v54, %v378_v53  ;;  %v410_v2 = vld [vmem:[#allocation5 + $0x158] sm:$0xff] }
 0x10e   : > { %2493 = vmatmul.mubr.msk.f32.gmra.mrb[30].mxu0 %vm627_vm0, %v3486_v37  ;;  %2697 = vmatprep.subr.bf16.mxu1 %v2696_v11  ;;  %v393_v11 = vld [vmem:[#allocation5 + $0xd0] sm:$0xff]  ;;  %v2734_v1 = vpack.c.bf16 %v391_v57, %v375_v56  ;;  %v414_v54 = vld [vmem:[#allocation5 + $0x178] sm:$0xff]  ;;  %v411_v57 = vld [vmem:[#allocation5 + $0x160] sm:$0xff] }
 0x10f   : > { %2497 = vmatmul.mubr.msk.f32.gmra.mrb[30].mxu1 %vm627_vm0, %v3486_v37  ;;  %2683 = vmatpush1.bf16.msra.mxu0 %v2682_v63  ;;  %v2720_v37 = vpack.c.bf16 %v422_v15, %v406_v14  ;;  %v424_v63 = vld [vmem:[#allocation5 + $0x1c8] sm:$0xff]  ;;  %v2750_v4 = vpack.c.bf16 %v393_v11, %v377_v59  ;;  %v442_v15 = vld [vmem:[#allocation5 + $0x258] sm:$0xff]  ;;  %v413_v11 = vld [vmem:[#allocation5 + $0x170] sm:$0xff] }
 0x110   : > { %2699 = vmatpush1.bf16.msra.mxu1 %v2698_v3  ;;  %1512 = vmatprep.mubr.f32.mxu0 %v3148_v0  ;;  %v426_v3 = vld [vmem:[#allocation5 + $0x1d8] sm:$0xff]  ;;  %v2736_v7 = vpack.c.bf16 %v424_v63, %v408_v62  ;;  %v444_v63 = vld [vmem:[#allocation5 + $0x268] sm:$0xff] }
 0x111   : > { %1601 = vmatprep.mubr.f32.mxu1 %v3148_v0  ;;  %2701 = vmatprep.subr.bf16.mxu0 %v2700_v6  ;;  %v423_v6 = vld [vmem:[#allocation5 + $0x1c0] sm:$0xff]  ;;  %v2752_v9 = vpack.c.bf16 %v426_v3, %v410_v2  ;;  %v446_v3 = vld [vmem:[#allocation5 + $0x278] sm:$0xff] }
 0x112   : > { %2498 = vmatmul.mubr.msk.f32.vlgmr.msra.gmra.mrb[32].mxu0 %vm627_vm0, %v3567_v12  ;;  %2717 = vmatprep.subr.bf16.mxu1 %v2716_v24  ;;  %v425_v24 = vld [vmem:[#allocation5 + $0x1d0] sm:$0xff]  ;;  %v2738_v14 = vpack.c.bf16 %v423_v6, %v407_v5  ;;  %v443_v6 = vld [vmem:[#allocation5 + $0x260] sm:$0xff] }
 0x113   : > { %2502 = vmatmul.mubr.msk.f32.vlgmr.msra.gmra.mrb[32].mxu1 %vm627_vm0, %v3567_v12  ;;  %2703 = vmatpush1.bf16.msra.mxu0 %v2702_v13  ;;  %v456_v13 = vld [vmem:[#allocation5 + $0x2c8] sm:$0xff]  ;;  %v2754_v17 = vpack.c.bf16 %v425_v24, %v409_v8  ;;  %v445_v24 = vld [vmem:[#allocation5 + $0x270] sm:$0xff] }
 0x114   : > { %2719 = vmatpush1.bf16.msra.mxu1 %v2718_v16  ;;  %1518 = vmatprep.mubr.f32.mxu0 %v3148_v0  ;;  %v458_v16 = vld [vmem:[#allocation5 + $0x2d8] sm:$0xff]  ;;  %v2740_v20 = vpack.c.bf16 %v456_v13, %v440_v10  ;;  %v476_v13 = vld [vmem:[#allocation5 + $0x368] sm:$0xff] }
 0x115   : > { %1607 = vmatprep.mubr.f32.mxu1 %v3148_v0  ;;  %2705 = vmatprep.subr.bf16.mxu0 %v2704_v19  ;;  %v455_v19 = vld [vmem:[#allocation5 + $0x2c0] sm:$0xff]  ;;  %v2756_v22 = vpack.c.bf16 %v458_v16, %v442_v15  ;;  %v478_v16 = vld [vmem:[#allocation5 + $0x378] sm:$0xff] }
 0x116   : > { %2499 = vmatmul.mubr.msk.f32.gmra.mrb[34].mxu0 %vm627_vm0, %v3576_v25  ;;  %2721 = vmatprep.subr.bf16.mxu1 %v2720_v37  ;;  %v457_v37 = vld [vmem:[#allocation5 + $0x2d0] sm:$0xff]  ;;  %v2742_v27 = vpack.c.bf16 %v455_v19, %v439_v18  ;;  %v475_v19 = vld [vmem:[#allocation5 + $0x360] sm:$0xff] }
 0x117   : > { %2503 = vmatmul.mubr.msk.f32.gmra.mrb[34].mxu1 %vm627_vm0, %v3576_v25  ;;  %2707 = vmatpush1.bf16.msra.mxu0 %v2706_v26  ;;  %v488_v26 = vld [vmem:[#allocation5 + $0x3c8] sm:$0xff]  ;;  %v2758_v30 = vpack.c.bf16 %v457_v37, %v441_v21  ;;  %v477_v37 = vld [vmem:[#allocation5 + $0x370] sm:$0xff] }
 0x118   : > { %2723 = vmatpush1.bf16.msra.mxu1 %v2722_v29  ;;  %1524 = vmatprep.mubr.f32.mxu0 %v3148_v0  ;;  %v490_v29 = vld [vmem:[#allocation5 + $0x3d8] sm:$0xff]  ;;  %v2744_v33 = vpack.c.bf16 %v488_v26, %v472_v23 }
 0x119   : > { %1613 = vmatprep.mubr.f32.mxu1 %v3148_v0  ;;  %2709 = vmatprep.subr.bf16.mxu0 %v2708_v32  ;;  %v487_v32 = vld [vmem:[#allocation5 + $0x3c0] sm:$0xff]  ;;  %v2760_v36 = vpack.c.bf16 %v490_v29, %v474_v28 }
 0x11a   : > { %2500 = vmatmul.mubr.msk.f32.gmra.mrb[36].mxu0 %vm627_vm0, %v3585_v39  ;;  %2725 = vmatprep.subr.bf16.mxu1 %v2724_v35  ;;  %v489_v35 = vld [vmem:[#allocation5 + $0x3d0] sm:$0xff]  ;;  %v2746_v41 = vpack.c.bf16 %v487_v32, %v471_v31 }
 0x11b   : > { %2504 = vmatmul.mubr.msk.f32.gmra.mrb[36].mxu1 %vm627_vm0, %v3585_v39  ;;  %2711 = vmatpush1.bf16.msra.mxu0 %v2710_v40  ;;  %v396_v40 = vld [vmem:[#allocation5 + $0xe8] sm:$0xff]  ;;  %v2762_v44 = vpack.c.bf16 %v489_v35, %v473_v34 }
 0x11c   : > { %2727 = vmatpush1.bf16.msra.mxu1 %v2726_v43  ;;  %1530 = vmatprep.mubr.f32.mxu0 %v3148_v0  ;;  %v398_v43 = vld [vmem:[#allocation5 + $0xf8] sm:$0xff]  ;;  %v2764_v47 = vpack.c.bf16 %v396_v40, %v380_v38 }
 0x11d   : > { %1619 = vmatprep.mubr.f32.mxu1 %v3148_v0  ;;  %2713 = vmatprep.subr.bf16.mxu0 %v2712_v46  ;;  %v395_v46 = vld [vmem:[#allocation5 + $0xe0] sm:$0xff]  ;;  %v2780_v49 = vpack.c.bf16 %v398_v43, %v382_v42 }
 0x11e   : > { %2501 = vmatmul.mubr.msk.f32.gmra.mrb[38].mxu0 %vm627_vm0, %v3594_v51  ;;  %2729 = vmatprep.subr.bf16.mxu1 %v2728_v61  ;;  %v397_v61 = vld [vmem:[#allocation5 + $0xf0] sm:$0xff]  ;;  %v2766_v53 = vpack.c.bf16 %v395_v46, %v379_v45 }
 0x11f   : > { %2505 = vmatmul.mubr.msk.f32.gmra.mrb[38].mxu1 %vm627_vm0, %v3594_v51  ;;  %2715 = vmatpush1.bf16.msra.mxu0 %v2714_v52  ;;  %v428_v52 = vld [vmem:[#allocation5 + $0x1e8] sm:$0xff]  ;;  %v2782_v56 = vpack.c.bf16 %v397_v61, %v381_v48 }
 0x120   : > { %2731 = vmatpush1.bf16.msra.mxu1 %v2730_v55  ;;  %1690 = vmatprep.mubr.f32.mxu0 %v3148_v0  ;;  %v430_v55 = vld [vmem:[#allocation5 + $0x1f8] sm:$0xff]  ;;  %v2768_v59 = vpack.c.bf16 %v428_v52, %v412_v50 }
 0x121   : > { %1779 = vmatprep.mubr.f32.mxu1 %v3148_v0  ;;  %2733 = vmatprep.subr.bf16.mxu0 %v2732_v58  ;;  %v427_v58 = vld [vmem:[#allocation5 + $0x1e0] sm:$0xff]  ;;  %v2784_v62 = vpack.c.bf16 %v430_v55, %v414_v54 }
 0x122   : > { %2506 = vmatmul.mubr.msk.f32.vlgmr.msra.gmra.mrb[40].mxu0 %vm627_vm0, %v3567_v12  ;;  %2749 = vmatprep.subr.bf16.mxu1 %v2748_v60  ;;  %v429_v60 = vld [vmem:[#allocation5 + $0x1f0] sm:$0xff]  ;;  %v2770_v2 = vpack.c.bf16 %v427_v58, %v411_v57 }
 0x123   : > { %2510 = vmatmul.mubr.msk.f32.vlgmr.msra.gmra.mrb[40].mxu1 %vm627_vm0, %v3567_v12  ;;  %2735 = vmatpush1.bf16.msra.mxu0 %v2734_v1  ;;  %v460_v1 = vld [vmem:[#allocation5 + $0x2e8] sm:$0xff]  ;;  %v2786_v5 = vpack.c.bf16 %v429_v60, %v413_v11 }
 0x124   : > { %2751 = vmatpush1.bf16.msra.mxu1 %v2750_v4  ;;  %1696 = vmatprep.mubr.f32.mxu0 %v3148_v0  ;;  %v462_v4 = vld [vmem:[#allocation5 + $0x2f8] sm:$0xff]  ;;  %v2772_v8 = vpack.c.bf16 %v460_v1, %v444_v63 }
 0x125   : > { %1785 = vmatprep.mubr.f32.mxu1 %v3148_v0  ;;  %2737 = vmatprep.subr.bf16.mxu0 %v2736_v7  ;;  %v459_v7 = vld [vmem:[#allocation5 + $0x2e0] sm:$0xff]  ;;  %v2788_v10 = vpack.c.bf16 %v462_v4, %v446_v3 }
 0x126   : > { %2507 = vmatmul.mubr.msk.f32.gmra.mrb[42].mxu0 %vm627_vm0, %v3576_v25  ;;  %2753 = vmatprep.subr.bf16.mxu1 %v2752_v9  ;;  %v461_v9 = vld [vmem:[#allocation5 + $0x2f0] sm:$0xff]  ;;  %v2774_v15 = vpack.c.bf16 %v459_v7, %v443_v6 }
 0x127   : > { %2511 = vmatmul.mubr.msk.f32.gmra.mrb[42].mxu1 %vm627_vm0, %v3576_v25  ;;  %2739 = vmatpush1.bf16.msra.mxu0 %v2738_v14  ;;  %v492_v14 = vld [vmem:[#allocation5 + $0x3e8] sm:$0xff]  ;;  %v2790_v18 = vpack.c.bf16 %v461_v9, %v445_v24 }
 0x128   : > { %2755 = vmatpush1.bf16.msra.mxu1 %v2754_v17  ;;  %1702 = vmatprep.mubr.f32.mxu0 %v3148_v0  ;;  %v494_v17 = vld [vmem:[#allocation5 + $0x3f8] sm:$0xff]  ;;  %v2776_v21 = vpack.c.bf16 %v492_v14, %v476_v13  ;;  %v1356_v14 = vlaneseq }
 0x129   : > { %1791 = vmatprep.mubr.f32.mxu1 %v3148_v0  ;;  %2741 = vmatprep.subr.bf16.mxu0 %v2740_v20  ;;  %v491_v20 = vld [vmem:[#allocation5 + $0x3e0] sm:$0xff]  ;;  %v2792_v23 = vpack.c.bf16 %v494_v17, %v478_v16 }
 0x12a   : > { %2508 = vmatmul.mubr.msk.f32.gmra.mrb[44].mxu0 %vm627_vm0, %v3585_v39  ;;  %2757 = vmatprep.subr.bf16.mxu1 %v2756_v22  ;;  %v493_v22 = vld [vmem:[#allocation5 + $0x3f0] sm:$0xff]  ;;  %v2778_v26 = vpack.c.bf16 %v491_v20, %v475_v19  ;;  %v3784_v19 = vshrl.u32 %v1356_v14, 7 }
 0x12b   : > { %2512 = vmatmul.mubr.msk.f32.gmra.mrb[44].mxu1 %vm627_vm0, %v3585_v39  ;;  %2743 = vmatpush1.bf16.msra.mxu0 %v2742_v27  ;;  %v2794_v27 = vpack.c.bf16 %v493_v22, %v477_v37 }
 0x12c   : > { %2759 = vmatpush1.bf16.msra.mxu1 %v2758_v30  ;;  %1708 = vmatprep.mubr.f32.mxu0 %v3148_v0  ;;  %v4144_v14 = vsub.s32 1, %v3784_v19 }
 0x12d   : > { %1797 = vmatprep.mubr.f32.mxu1 %v3148_v0  ;;  %2745 = vmatprep.subr.bf16.mxu0 %v2744_v33 }
 0x12e   : > { %2509 = vmatmul.mubr.msk.f32.gmra.mrb[46].mxu0 %vm627_vm0, %v3594_v51  ;;  %2761 = vmatprep.subr.bf16.mxu1 %v2760_v36 }
 0x12f   : > { %2513 = vmatmul.mubr.msk.f32.gmra.mrb[46].mxu1 %vm627_vm0, %v3594_v51  ;;  %2747 = vmatpush1.bf16.msra.mxu0 %v2746_v41 }
 0x130   : > { %2763 = vmatpush1.bf16.msra.mxu1 %v2762_v44  ;;  %1868 = vmatprep.mubr.f32.mxu0 %v3148_v0 }
 0x131   : > { %1957 = vmatprep.mubr.f32.mxu1 %v3148_v0  ;;  %2765 = vmatprep.subr.bf16.mxu0 %v2764_v47 }
 0x132   : > { %2514 = vmatmul.mubr.msk.f32.vlgmr.msra.gmra.mrb[48].mxu0 %vm627_vm0, %v3567_v12  ;;  %2781 = vmatprep.subr.bf16.mxu1 %v2780_v49 }
 0x133   : > { %2518 = vmatmul.mubr.msk.f32.vlgmr.msra.gmra.mrb[48].mxu1 %vm627_vm0, %v3567_v12  ;;  %2767 = vmatpush1.bf16.msra.mxu0 %v2766_v53 }
 0x134   : > { %2783 = vmatpush1.bf16.msra.mxu1 %v2782_v56  ;;  %1874 = vmatprep.mubr.f32.mxu0 %v3148_v0 }
 0x135   : > { %1963 = vmatprep.mubr.f32.mxu1 %v3148_v0  ;;  %2769 = vmatprep.subr.bf16.mxu0 %v2768_v59 }
 0x136   : > { %2515 = vmatmul.mubr.msk.f32.gmra.mrb[50].mxu0 %vm627_vm0, %v3576_v25  ;;  %2785 = vmatprep.subr.bf16.mxu1 %v2784_v62 }
 0x137   : > { %2519 = vmatmul.mubr.msk.f32.gmra.mrb[50].mxu1 %vm627_vm0, %v3576_v25  ;;  %2771 = vmatpush1.bf16.msra.mxu0 %v2770_v2 }
 0x138   : > { %2787 = vmatpush1.bf16.msra.mxu1 %v2786_v5  ;;  %1880 = vmatprep.mubr.f32.mxu0 %v3148_v0 }
 0x139   : > { %1969 = vmatprep.mubr.f32.mxu1 %v3148_v0  ;;  %2773 = vmatprep.subr.bf16.mxu0 %v2772_v8 }
 0x13a   : > { %2516 = vmatmul.mubr.msk.f32.gmra.mrb[52].mxu0 %vm627_vm0, %v3585_v39  ;;  %2789 = vmatprep.subr.bf16.mxu1 %v2788_v10 }
 0x13b   : > { %2520 = vmatmul.mubr.msk.f32.gmra.mrb[52].mxu1 %vm627_vm0, %v3585_v39  ;;  %2775 = vmatpush1.bf16.msra.mxu0 %v2774_v15 }
 0x13c   : > { %2791 = vmatpush1.bf16.msra.mxu1 %v2790_v18  ;;  %1886 = vmatprep.mubr.f32.mxu0 %v3148_v0 }
 0x13d   : > { %1975 = vmatprep.mubr.f32.mxu1 %v3148_v0  ;;  %2777 = vmatprep.subr.bf16.mxu0 %v2776_v21 }
 0x13e   : > { %2517 = vmatmul.mubr.msk.f32.gmra.mrb[54].mxu0 %vm627_vm0, %v3594_v51  ;;  %2793 = vmatprep.subr.bf16.mxu1 %v2792_v23  ;;  %v4142_v23 = vsub.s32 0, %v3784_v19 }
 0x13f   : > { %2521 = vmatmul.mubr.msk.f32.gmra.mrb[54].mxu1 %vm627_vm0, %v3594_v51  ;;  %2779 = vmatpush1.bf16.msra.mxu0 %v2778_v26 }
 0x140   : > { %2795 = vmatpush1.bf16.msra.mxu1 %v2794_v27  ;;  %2046 = vmatprep.mubr.f32.mxu0 %v3148_v0  ;;  %v3797_v27 = vld [vmem:[#allocation7] sm:$0xff] }
 0x141   : > { %2135 = vmatprep.mubr.f32.mxu1 %v3148_v0 }
 0x142   : > { %2522 = vmatmul.mubr.msk.f32.vlgmr.msra.gmra.mrb[56].mxu0 %vm627_vm0, %v3567_v12 }
 0x143   : > { %2526 = vmatmul.mubr.msk.f32.vlgmr.msra.gmra.mrb[56].mxu1 %vm627_vm0, %v3567_v12  ;;  %2052 = vmatprep.mubr.f32.mxu0 %v3148_v0 }
 0x144   : > { %2141 = vmatprep.mubr.f32.mxu1 %v3148_v0 }
 0x146   : > { %2523 = vmatmul.mubr.msk.f32.gmra.mrb[58].mxu0 %vm627_vm0, %v3576_v25 }
 0x147   : > { %2527 = vmatmul.mubr.msk.f32.gmra.mrb[58].mxu1 %vm627_vm0, %v3576_v25  ;;  %2058 = vmatprep.mubr.f32.mxu0 %v3148_v0 }
 0x148   : > { %2147 = vmatprep.mubr.f32.mxu1 %v3148_v0 }
 0x14a   : > { %2524 = vmatmul.mubr.msk.f32.gmra.mrb[60].mxu0 %vm627_vm0, %v3585_v39 }
 0x14b   : > { %2528 = vmatmul.mubr.msk.f32.gmra.mrb[60].mxu1 %vm627_vm0, %v3585_v39  ;;  %2064 = vmatprep.mubr.f32.mxu0 %v3148_v0 }
 0x14c   : > { %2153 = vmatprep.mubr.f32.mxu1 %v3148_v0 }
 0x14e   : > { %2525 = vmatmul.mubr.msk.f32.gmra.mrb[62].mxu0 %vm627_vm0, %v3594_v51 }
 0x14f   : > { %2529 = vmatmul.mubr.msk.f32.gmra.mrb[62].mxu1 %vm627_vm0, %v3594_v51 }
 0x1a5   : > { %v3674_v12 = vpop.f32.mrb[0].mxu0 }
 0x1a6   : > { %v3676_v25 = vpop.f32.mrb[0].mxu1  ;;  %v3678_v28 = vpop.f32.mrb[1].mxu0 }
 0x1a7   : > { %v3680_v29 = vpop.f32.mrb[1].mxu1 }
 0x1a9   : > { %v3682_v30 = vpop.f32.mrb[2].mxu0 }
 0x1aa   : > { %v3684_v39 = vpop.f32.mrb[2].mxu1  ;;  %v3686_v31 = vpop.f32.mrb[3].mxu0 }
 0x1ab   : > { %v3688_v0 = vpop.f32.mrb[3].mxu1 }
 0x1ad   : > { %v3690_v32 = vpop.f32.mrb[4].mxu0 }
 0x1ae   : > { %v3692_v33 = vpop.f32.mrb[4].mxu1  ;;  %v3694_v51 = vpop.f32.mrb[5].mxu0 }
 0x1af   : > { %v3696_v34 = vpop.f32.mrb[5].mxu1 }
 0x1b1   : > { %v3698_v35 = vpop.f32.mrb[6].mxu0 }
 0x1b2   : > { %v3700_v36 = vpop.f32.mrb[6].mxu1  ;;  %v3702_v38 = vpop.f32.mrb[7].mxu0 }
 0x1b3   : > { %v3704_v40 = vpop.f32.mrb[7].mxu1 }
 0x1b5   : > { %v3706_v41 = vpop.f32.mrb[8].mxu0 }
 0x1b6   : > { %v3708_v42 = vpop.f32.mrb[8].mxu1  ;;  %v3710_v43 = vpop.f32.mrb[9].mxu0 }
 0x1b7   : > { %v3712_v44 = vpop.f32.mrb[9].mxu1 }
 0x1b9   : > { %v3714_v45 = vpop.f32.mrb[10].mxu0 }
 0x1ba   : > { %v3716_v46 = vpop.f32.mrb[10].mxu1  ;;  %v3718_v47 = vpop.f32.mrb[11].mxu0 }
 0x1bb   : > { %v3720_v48 = vpop.f32.mrb[11].mxu1 }
 0x1bd   : > { %v3722_v61 = vpop.f32.mrb[12].mxu0 }
 0x1be   : > { %v3724_v49 = vpop.f32.mrb[12].mxu1  ;;  %v3726_v50 = vpop.f32.mrb[13].mxu0 }
 0x1bf   : > { %v3728_v52 = vpop.f32.mrb[13].mxu1 }
 0x1c1   : > { %v3730_v53 = vpop.f32.mrb[14].mxu0 }
 0x1c2   : > { %v3732_v54 = vpop.f32.mrb[14].mxu1  ;;  %v3734_v55 = vpop.f32.mrb[15].mxu0 }
 0x1c3   : > { %v3736_v56 = vpop.f32.mrb[15].mxu1 }
 0x1c5   : > { %v3738_v57 = vpop.f32.mrb[16].mxu0 }
 0x1c6   : > { %v3740_v58 = vpop.f32.mrb[16].mxu1  ;;  %v3742_v59 = vpop.f32.mrb[17].mxu0 }
 0x1c7   : > { %v3744_v11 = vpop.f32.mrb[17].mxu1 }
 0x1c9   : > { %v3746_v60 = vpop.f32.mrb[18].mxu0 }
 0x1ca   : > { %v3748_v62 = vpop.f32.mrb[18].mxu1  ;;  %v3750_v63 = vpop.f32.mrb[19].mxu0 }
 0x1cb   : > { %v3752_v1 = vpop.f32.mrb[19].mxu1 }
 0x1cd   : > { %v3754_v2 = vpop.f32.mrb[20].mxu0 }
 0x1ce   : > { %v3756_v3 = vpop.f32.mrb[20].mxu1  ;;  %v3758_v4 = vpop.f32.mrb[21].mxu0 }
 0x1cf   : > { %v3760_v5 = vpop.f32.mrb[21].mxu1 }
 0x1d1   : > { %v3762_v6 = vpop.f32.mrb[22].mxu0 }
 0x1d2   : > { %v3764_v7 = vpop.f32.mrb[22].mxu1  ;;  %v3766_v8 = vpop.f32.mrb[23].mxu0 }
 0x1d3   : > { %4170 = vst [vmem:[#allocation19_spill] sm:$0xff] %v3764_v7  ;;  %4171 = vst [vmem:[#allocation20_spill] sm:$0xff] %v3766_v8  ;;  %v3768_v24 = vpop.f32.mrb[23].mxu1 }
 0x1d4   : > { %4172 = vst [vmem:[#allocation21_spill] sm:$0xff] %v3768_v24 }
 0x1d5   : > { %v3770_v9 = vpop.f32.mrb[24].mxu0 }
 0x1d6   : > { %4173 = vst [vmem:[#allocation22_spill] sm:$0xff] %v3770_v9  ;;  %v3772_v10 = vpop.f32.mrb[24].mxu1  ;;  %v3774_v13 = vpop.f32.mrb[25].mxu0 }
 0x1d7   : > { %4174 = vst [vmem:[#allocation23_spill] sm:$0xff] %v3772_v10  ;;  %4175 = vst [vmem:[#allocation24_spill] sm:$0xff] %v3774_v13  ;;  %v3776_v15 = vpop.f32.mrb[25].mxu1 }
 0x1d8   : > { %4176 = vst [vmem:[#allocation25_spill] sm:$0xff] %v3776_v15 }
 0x1d9   : > { %v3778_v16 = vpop.f32.mrb[26].mxu0 }
 0x1da   : > { %4177 = vst [vmem:[#allocation26_spill] sm:$0xff] %v3778_v16  ;;  %v3780_v17 = vpop.f32.mrb[26].mxu1  ;;  %v3782_v18 = vpop.f32.mrb[27].mxu0 }
 0x1db   : > { %4178 = vst [vmem:[#allocation27_spill] sm:$0xff] %v3780_v17  ;;  %4179 = vst [vmem:[#allocation28_spill] sm:$0xff] %v3782_v18  ;;  %v3786_v20 = vpop.f32.mrb[27].mxu1  ;;  %v4143_v17 = vsub.s32 2, %v3784_v19  ;;  %v1363_v18 = vrot.slane %v3797_v27, %v4144_v14 }
 0x1dc   : > { %4180 = vst [vmem:[#allocation29_spill] sm:$0xff] %v3786_v20 }
 0x1dd   : > { %v3788_v21 = vpop.f32.mrb[28].mxu0 }
 0x1de   : > { %4181 = vst [vmem:[#allocation30_spill] sm:$0xff] %v3788_v21  ;;  %v3790_v37 = vpop.f32.mrb[28].mxu1  ;;  %v3792_v22 = vpop.f32.mrb[29].mxu0 }
 0x1df   : > { %4182 = vst [vmem:[#allocation31_spill] sm:$0xff] %v3790_v37  ;;  %4183 = vst [vmem:[#allocation32_spill] sm:$0xff] %v3792_v22  ;;  %v3795_v26 = vpop.f32.mrb[29].mxu1  ;;  %v1359_v22 = vrot.slane %v3797_v27, %v4142_v23 }
 0x1e0   : > { %4184 = vst [vmem:[#allocation33_spill] sm:$0xff] %v3795_v26  ;;  %v1367_v26 = vrot.slane %v3797_v27, %v4143_v17 }
 0x1e1   : > { %v3802_v20 = vpop.f32.mrb[30].mxu0 }
 0x1e2   : > { %4185 = vst [vmem:[#allocation34_spill] sm:$0xff] %v3802_v20  ;;  %v3804_v21 = vpop.f32.mrb[30].mxu1  ;;  %v3806_v16 = vpop.f32.mrb[31].mxu0  ;;  %v4189_v20 = vsub.s32 3, %v3784_v19 }
 0x1e3   : > { %4186 = vst [vmem:[#allocation35_spill] sm:$0xff] %v3804_v21  ;;  %4187 = vst [vmem:[#allocation36_spill] sm:$0xff] %v3806_v16  ;;  %v3811_v37 = vpop.f32.mrb[31].mxu1 }
 0x1e4   : > { %4188 = vst [vmem:[#allocation37_spill] sm:$0xff] %v3811_v37  ;;  %v3823_v21 = vrot.slane %v3797_v27, %v4189_v20 }
 0x1e5   : > { %v1514_v16 = vpop.f32.mrb[32].mxu0 }
 0x1e6   : > { %v1515_v15 = vadd.f32 %v1514_v16, %v1359_v22  ;;  %v1603_v13 = vpop.f32.mrb[32].mxu1  ;;  %v1516_v23 = vpop.f32.mrb[33].mxu0 }
 0x1e7   : > { %v1604_v10 = vadd.f32 %v1603_v13, %v1367_v26  ;;  %v1517_v37 = vadd.f32 %v1516_v23, %v1363_v18  ;;  %v1605_v9 = vpop.f32.mrb[33].mxu1 }
 0x1e8   : > { %v2160_v24 = vmul.f32 %v1515_v15, %v3674_v12  ;;  %v1606_v17 = vadd.f32 %v1605_v9, %v3823_v21 }
 0x1e9   : > { %v2162_v8 = vmul.f32 %v1604_v10, %v3676_v25  ;;  %v2161_v14 = vmul.f32 %v1517_v37, %v3678_v28  ;;  %v1520_v7 = vpop.f32.mrb[34].mxu0 }
 0x1ea   : > { %2224 = vst [vmem:[%s3829_s26] sm:$0xff] %v2160_v24  ;;  %v2163_v13 = vmul.f32 %v1606_v17, %v3680_v29  ;;  %v1521_v16 = vadd.f32 %v1520_v7, %v1359_v22  ;;  %v1609_v20 = vpop.f32.mrb[34].mxu1  ;;  %v1522_v12 = vpop.f32.mrb[35].mxu0 }
 0x1eb   : > { %2226 = vst [vmem:[%s3829_s26 + $0x10] sm:$0xff] %v2162_v8  ;;  %2225 = vst [vmem:[%s3829_s26 + $0x8] sm:$0xff] %v2161_v14  ;;  %v1610_v25 = vadd.f32 %v1609_v20, %v1367_v26  ;;  %v1523_v28 = vadd.f32 %v1522_v12, %v1363_v18  ;;  %v1611_v9 = vpop.f32.mrb[35].mxu1  ;;  %v1374_v14 = vsub.s32 4, %v3784_v19  ;;  %v1386_v12 = vsub.s32 7, %v3784_v19 }
 0x1ec   : > { %2227 = vst [vmem:[%s3829_s26 + $0x18] sm:$0xff] %v2163_v13  ;;  %v2176_v10 = vmul.f32 %v1521_v16, %v3682_v30  ;;  %v1612_v15 = vadd.f32 %v1611_v9, %v3823_v21 }
 0x1ed   : > { %v2178_v24 = vmul.f32 %v1610_v25, %v3684_v39  ;;  %v2177_v29 = vmul.f32 %v1523_v28, %v3686_v31  ;;  %v1526_v7 = vpop.f32.mrb[36].mxu0  ;;  %v1382_v39 = vsub.s32 6, %v3784_v19  ;;  %v1378_v31 = vsub.s32 5, %v3784_v19 }
 0x1ee   : > { %2240 = vst [vmem:[%s3829_s26 + $0x80] sm:$0xff] %v2176_v10  ;;  %v2179_v8 = vmul.f32 %v1612_v15, %v3688_v0  ;;  %v1527_v17 = vadd.f32 %v1526_v7, %v1359_v22  ;;  %v1615_v37 = vpop.f32.mrb[36].mxu1  ;;  %v1528_v23 = vpop.f32.mrb[37].mxu0 }
 0x1ef   : > { %2242 = vst [vmem:[%s3829_s26 + $0x90] sm:$0xff] %v2178_v24  ;;  %2241 = vst [vmem:[%s3829_s26 + $0x88] sm:$0xff] %v2177_v29  ;;  %v1616_v30 = vadd.f32 %v1615_v37, %v1367_v26  ;;  %v1529_v13 = vadd.f32 %v1528_v23, %v1363_v18  ;;  %v1617_v16 = vpop.f32.mrb[37].mxu1 }
 0x1f0   : > { %2243 = vst [vmem:[%s3829_s26 + $0x98] sm:$0xff] %v2179_v8  ;;  %v2192_v0 = vmul.f32 %v1527_v17, %v3690_v32  ;;  %v1618_v20 = vadd.f32 %v1617_v16, %v3823_v21  ;;  %v3858_v32 = vrot.slane %v3797_v27, %v1374_v14 }
 0x1f1   : > { %v2194_v25 = vmul.f32 %v1616_v30, %v3692_v33  ;;  %v2193_v28 = vmul.f32 %v1529_v13, %v3694_v51  ;;  %v1532_v9 = vpop.f32.mrb[38].mxu0  ;;  %v3865_v51 = vrot.slane %v3797_v27, %v1382_v39 }
 0x1f2   : > { %2256 = vst [vmem:[%s3829_s26 + $0x100] sm:$0xff] %v2192_v0  ;;  %v2195_v10 = vmul.f32 %v1618_v20, %v3696_v34  ;;  %v1533_v15 = vadd.f32 %v1532_v9, %v1359_v22  ;;  %v1621_v24 = vpop.f32.mrb[38].mxu1  ;;  %v1534_v29 = vpop.f32.mrb[39].mxu0  ;;  %v3870_v34 = vrot.slane %v3797_v27, %v1378_v31 }
 0x1f3   : > { %2258 = vst [vmem:[%s3829_s26 + $0x110] sm:$0xff] %v2194_v25  ;;  %2257 = vst [vmem:[%s3829_s26 + $0x108] sm:$0xff] %v2193_v28  ;;  %v1622_v7 = vadd.f32 %v1621_v24, %v1367_v26  ;;  %v1535_v33 = vadd.f32 %v1534_v29, %v1363_v18  ;;  %v1623_v8 = vpop.f32.mrb[39].mxu1  ;;  %v3878_v18 = vrot.slane %v3797_v27, %v1386_v12 }
 0x1f4   : > { %2259 = vst [vmem:[%s3829_s26 + $0x118] sm:$0xff] %v2195_v10  ;;  %v2208_v22 = vmul.f32 %v1533_v15, %v3698_v35  ;;  %v1624_v26 = vadd.f32 %v1623_v8, %v3823_v21 }
 0x1f5   : > { %v2210_v17 = vmul.f32 %v1622_v7, %v3700_v36  ;;  %v2209_v37 = vmul.f32 %v1535_v33, %v3702_v38  ;;  %v1692_v23 = vpop.f32.mrb[40].mxu0 }
 0x1f6   : > { %2272 = vst [vmem:[%s3829_s26 + $0x180] sm:$0xff] %v2208_v22  ;;  %v2211_v30 = vmul.f32 %v1624_v26, %v3704_v40  ;;  %v1693_v13 = vadd.f32 %v1692_v23, %v3858_v32  ;;  %v1781_v35 = vpop.f32.mrb[40].mxu1  ;;  %v1694_v16 = vpop.f32.mrb[41].mxu0  ;;  %v3913_v23 = vld [vmem:[#allocation7 + $0x8] sm:$0xff] }
 0x1f7   : > { %2274 = vst [vmem:[%s3829_s26 + $0x190] sm:$0xff] %v2210_v17  ;;  %2273 = vst [vmem:[%s3829_s26 + $0x188] sm:$0xff] %v2209_v37  ;;  %v1782_v21 = vadd.f32 %v1781_v35, %v3865_v51  ;;  %v1695_v27 = vadd.f32 %v1694_v16, %v3870_v34  ;;  %v1783_v36 = vpop.f32.mrb[41].mxu1 }
 0x1f8   : > { %2275 = vst [vmem:[%s3829_s26 + $0x198] sm:$0xff] %v2211_v30  ;;  %v2164_v38 = vmul.f32 %v1693_v13, %v3706_v41  ;;  %v1784_v0 = vadd.f32 %v1783_v36, %v3878_v18 }
 0x1f9   : > { %v2166_v40 = vmul.f32 %v1782_v21, %v3708_v42  ;;  %v2165_v20 = vmul.f32 %v1695_v27, %v3710_v43  ;;  %v1698_v25 = vpop.f32.mrb[42].mxu0 }
 0x1fa   : > { %2228 = vst [vmem:[%s3829_s26 + $0x20] sm:$0xff] %v2164_v38  ;;  %v2167_v28 = vmul.f32 %v1784_v0, %v3712_v44  ;;  %v1699_v9 = vadd.f32 %v1698_v25, %v3858_v32  ;;  %v1787_v10 = vpop.f32.mrb[42].mxu1  ;;  %v1700_v15 = vpop.f32.mrb[43].mxu0  ;;  %v4190_v38 = vsub.s32 0, %v3784_v19 }
 0x1fb   : > { %2230 = vst [vmem:[%s3829_s26 + $0x30] sm:$0xff] %v2166_v40  ;;  %2229 = vst [vmem:[%s3829_s26 + $0x28] sm:$0xff] %v2165_v20  ;;  %v1788_v41 = vadd.f32 %v1787_v10, %v3865_v51  ;;  %v1701_v24 = vadd.f32 %v1700_v15, %v3870_v34  ;;  %v1789_v42 = vpop.f32.mrb[43].mxu1  ;;  %v4192_v40 = vsub.s32 1, %v3784_v19 }
 0x1fc   : > { %2231 = vst [vmem:[%s3829_s26 + $0x38] sm:$0xff] %v2167_v28  ;;  %v2180_v43 = vmul.f32 %v1699_v9, %v3714_v45  ;;  %v1790_v29 = vadd.f32 %v1789_v42, %v3878_v18 }
 0x1fd   : > { %v2182_v44 = vmul.f32 %v1788_v41, %v3716_v46  ;;  %v2181_v7 = vmul.f32 %v1701_v24, %v3718_v47  ;;  %v1704_v33 = vpop.f32.mrb[44].mxu0  ;;  %v3940_v20 = vrot.slane %v3913_v23, %v4192_v40  ;;  %v4194_v40 = vld [vmem:[#allocation19_spill] sm:$0xff] }
 0x1fe   : > { %2244 = vst [vmem:[%s3829_s26 + $0xa0] sm:$0xff] %v2180_v43  ;;  %v2183_v8 = vmul.f32 %v1790_v29, %v3720_v48  ;;  %v1705_v22 = vadd.f32 %v1704_v33, %v3858_v32  ;;  %v1793_v26 = vpop.f32.mrb[44].mxu1  ;;  %v1706_v17 = vpop.f32.mrb[45].mxu0 }
 0x1ff   : > { %2246 = vst [vmem:[%s3829_s26 + $0xb0] sm:$0xff] %v2182_v44  ;;  %2245 = vst [vmem:[%s3829_s26 + $0xa8] sm:$0xff] %v2181_v7  ;;  %v1794_v45 = vadd.f32 %v1793_v26, %v3865_v51  ;;  %v1707_v37 = vadd.f32 %v1706_v17, %v3870_v34  ;;  %v1795_v46 = vpop.f32.mrb[45].mxu1 }
 0x200   : > { %2247 = vst [vmem:[%s3829_s26 + $0xb8] sm:$0xff] %v2183_v8  ;;  %v2196_v47 = vmul.f32 %v1705_v22, %v3722_v61  ;;  %v1796_v48 = vadd.f32 %v1795_v46, %v3878_v18  ;;  %v3926_v61 = vrot.slane %v3913_v23, %v4190_v38 }
 0x201   : > { %v2198_v30 = vmul.f32 %v1794_v45, %v3724_v49  ;;  %v2197_v13 = vmul.f32 %v1707_v37, %v3726_v50  ;;  %v1710_v35 = vpop.f32.mrb[46].mxu0 }
 0x202   : > { %2260 = vst [vmem:[%s3829_s26 + $0x120] sm:$0xff] %v2196_v47  ;;  %v2199_v16 = vmul.f32 %v1796_v48, %v3728_v52  ;;  %v1711_v21 = vadd.f32 %v1710_v35, %v3858_v32  ;;  %v1799_v27 = vpop.f32.mrb[46].mxu1  ;;  %v1712_v36 = vpop.f32.mrb[47].mxu0  ;;  %v4191_v52 = vsub.s32 2, %v3784_v19 }
 0x203   : > { %2262 = vst [vmem:[%s3829_s26 + $0x130] sm:$0xff] %v2198_v30  ;;  %2261 = vst [vmem:[%s3829_s26 + $0x128] sm:$0xff] %v2197_v13  ;;  %v1800_v49 = vadd.f32 %v1799_v27, %v3865_v51  ;;  %v1713_v50 = vadd.f32 %v1712_v36, %v3870_v34  ;;  %v1801_v0 = vpop.f32.mrb[47].mxu1  ;;  %v4193_v34 = vsub.s32 3, %v3784_v19 }
 0x204   : > { %v3935_v32 = vrot.slane %v3913_v23, %v4191_v52  ;;  %2263 = vst [vmem:[%s3829_s26 + $0x138] sm:$0xff] %v2199_v16  ;;  %v2212_v25 = vmul.f32 %v1711_v21, %v3730_v53  ;;  %v1802_v51 = vadd.f32 %v1801_v0, %v3878_v18 }
 0x205   : > { %v3948_v28 = vrot.slane %v3913_v23, %v4193_v34  ;;  %v2214_v9 = vmul.f32 %v1800_v49, %v3732_v54  ;;  %v2213_v10 = vmul.f32 %v1713_v50, %v3734_v55  ;;  %v1870_v15 = vpop.f32.mrb[48].mxu0  ;;  %v4196_v34 = vld [vmem:[#allocation21_spill] sm:$0xff] }
 0x206   : > { %2276 = vst [vmem:[%s3829_s26 + $0x1a0] sm:$0xff] %v2212_v25  ;;  %v2215_v41 = vmul.f32 %v1802_v51, %v3736_v56  ;;  %v1871_v24 = vadd.f32 %v1870_v15, %v3926_v61  ;;  %v1959_v53 = vpop.f32.mrb[48].mxu1  ;;  %v1872_v42 = vpop.f32.mrb[49].mxu0 }
 0x207   : > { %2278 = vst [vmem:[%s3829_s26 + $0x1b0] sm:$0xff] %v2214_v9  ;;  %2277 = vst [vmem:[%s3829_s26 + $0x1a8] sm:$0xff] %v2213_v10  ;;  %v1960_v18 = vadd.f32 %v1959_v53, %v3935_v32  ;;  %v1873_v43 = vadd.f32 %v1872_v42, %v3940_v20  ;;  %v1961_v54 = vpop.f32.mrb[49].mxu1  ;;  %v4199_v42 = vld [vmem:[#allocation24_spill] sm:$0xff] }
 0x208   : > { %2279 = vst [vmem:[%s3829_s26 + $0x1b8] sm:$0xff] %v2215_v41  ;;  %v2168_v55 = vmul.f32 %v1871_v24, %v3738_v57  ;;  %v1962_v29 = vadd.f32 %v1961_v54, %v3948_v28  ;;  %v4198_v24 = vld [vmem:[#allocation23_spill] sm:$0xff]  ;;  %v4200_v54 = vld [vmem:[#allocation25_spill] sm:$0xff] }
 0x209   : > { %v2170_v56 = vmul.f32 %v1960_v18, %v3740_v58  ;;  %v2169_v44 = vmul.f32 %v1873_v43, %v3742_v59  ;;  %v1876_v7 = vpop.f32.mrb[50].mxu0 }
 0x20a   : > { %2232 = vst [vmem:[%s3829_s26 + $0x40] sm:$0xff] %v2168_v55  ;;  %v2171_v33 = vmul.f32 %v1962_v29, %v3744_v11  ;;  %v1877_v8 = vadd.f32 %v1876_v7, %v3926_v61  ;;  %v1965_v22 = vpop.f32.mrb[50].mxu1  ;;  %v1878_v26 = vpop.f32.mrb[51].mxu0 }
 0x20b   : > { %2234 = vst [vmem:[%s3829_s26 + $0x50] sm:$0xff] %v2170_v56  ;;  %2233 = vst [vmem:[%s3829_s26 + $0x48] sm:$0xff] %v2169_v44  ;;  %v1966_v57 = vadd.f32 %v1965_v22, %v3935_v32  ;;  %v1879_v17 = vadd.f32 %v1878_v26, %v3940_v20  ;;  %v1967_v58 = vpop.f32.mrb[51].mxu1  ;;  %v4201_v22 = vld [vmem:[#allocation26_spill] sm:$0xff] }
 0x20c   : > { %2235 = vst [vmem:[%s3829_s26 + $0x58] sm:$0xff] %v2171_v33  ;;  %v2184_v59 = vmul.f32 %v1877_v8, %v3746_v60  ;;  %v1968_v45 = vadd.f32 %v1967_v58, %v3948_v28 }
 0x20d   : > { %v2186_v11 = vmul.f32 %v1966_v57, %v3748_v62  ;;  %v2185_v37 = vmul.f32 %v1879_v17, %v3750_v63  ;;  %v1882_v46 = vpop.f32.mrb[52].mxu0  ;;  %v4202_v17 = vld [vmem:[#allocation27_spill] sm:$0xff] }
 0x20e   : > { %2248 = vst [vmem:[%s3829_s26 + $0xc0] sm:$0xff] %v2184_v59  ;;  %v2187_v47 = vmul.f32 %v1968_v45, %v3752_v1  ;;  %v1883_v48 = vadd.f32 %v1882_v46, %v3926_v61  ;;  %v1971_v30 = vpop.f32.mrb[52].mxu1  ;;  %v1884_v13 = vpop.f32.mrb[53].mxu0  ;;  %v4203_v59 = vld [vmem:[#allocation28_spill] sm:$0xff] }
 0x20f   : > { %2250 = vst [vmem:[%s3829_s26 + $0xd0] sm:$0xff] %v2186_v11  ;;  %2249 = vst [vmem:[%s3829_s26 + $0xc8] sm:$0xff] %v2185_v37  ;;  %v1972_v60 = vadd.f32 %v1971_v30, %v3935_v32  ;;  %v1885_v35 = vadd.f32 %v1884_v13, %v3940_v20  ;;  %v1973_v62 = vpop.f32.mrb[53].mxu1  ;;  %v4204_v37 = vld [vmem:[#allocation29_spill] sm:$0xff] }
 0x210   : > { %2251 = vst [vmem:[%s3829_s26 + $0xd8] sm:$0xff] %v2187_v47  ;;  %v2200_v63 = vmul.f32 %v1883_v48, %v3754_v2  ;;  %v1974_v16 = vadd.f32 %v1973_v62, %v3948_v28  ;;  %v3994_v2 = vrot.slane %v3913_v23, %v1374_v14  ;;  %v4205_v62 = vld [vmem:[#allocation30_spill] sm:$0xff] }
 0x211   : > { %v2202_v1 = vmul.f32 %v1972_v60, %v3756_v3  ;;  %v2201_v21 = vmul.f32 %v1885_v35, %v3758_v4  ;;  %v1888_v27 = vpop.f32.mrb[54].mxu0 }
 0x212   : > { %2264 = vst [vmem:[%s3829_s26 + $0x140] sm:$0xff] %v2200_v63  ;;  %v2203_v36 = vmul.f32 %v1974_v16, %v3760_v5  ;;  %v1889_v38 = vadd.f32 %v1888_v27, %v3926_v61  ;;  %v1977_v49 = vpop.f32.mrb[54].mxu1  ;;  %v1890_v50 = vpop.f32.mrb[55].mxu0  ;;  %v4003_v5 = vrot.slane %v3913_v23, %v1382_v39  ;;  %v4008_v61 = vrot.slane %v3913_v23, %v1378_v31  ;;  %v4195_v39 = vld [vmem:[#allocation20_spill] sm:$0xff] }
 0x213   : > { %2266 = vst [vmem:[%s3829_s26 + $0x150] sm:$0xff] %v2202_v1  ;;  %2265 = vst [vmem:[%s3829_s26 + $0x148] sm:$0xff] %v2201_v21  ;;  %v1978_v3 = vadd.f32 %v1977_v49, %v3935_v32  ;;  %v1891_v4 = vadd.f32 %v1890_v50, %v3940_v20  ;;  %v1979_v0 = vpop.f32.mrb[55].mxu1  ;;  %v4016_v32 = vrot.slane %v3913_v23, %v1386_v12  ;;  %v4206_v1 = vld [vmem:[#allocation31_spill] sm:$0xff]  ;;  %v4207_v27 = vld [vmem:[#allocation32_spill] sm:$0xff] }
 0x214   : > { %2267 = vst [vmem:[%s3829_s26 + $0x158] sm:$0xff] %v2203_v36  ;;  %v2216_v14 = vmul.f32 %v1889_v38, %v3762_v6  ;;  %v1980_v52 = vadd.f32 %v1979_v0, %v3948_v28  ;;  %v4197_v28 = vld [vmem:[#allocation22_spill] sm:$0xff]  ;;  %v4208_v49 = vld [vmem:[#allocation33_spill] sm:$0xff] }
 0x215   : > { %v2218_v20 = vmul.f32 %v1978_v3, %v4194_v40  ;;  %v2217_v25 = vmul.f32 %v1891_v4, %v4195_v39  ;;  %v2048_v51 = vpop.f32.mrb[56].mxu0 }
 0x216   : > { %2280 = vst [vmem:[%s3829_s26 + $0x1c0] sm:$0xff] %v2216_v14  ;;  %v2219_v31 = vmul.f32 %v1980_v52, %v4196_v34  ;;  %v2049_v9 = vadd.f32 %v2048_v51, %v3994_v2  ;;  %v2137_v6 = vpop.f32.mrb[56].mxu1  ;;  %v2050_v10 = vpop.f32.mrb[57].mxu0  ;;  %v4211_v34 = vld [vmem:[#allocation36_spill] sm:$0xff] }
 0x217   : > { %2282 = vst [vmem:[%s3829_s26 + $0x1d0] sm:$0xff] %v2218_v20  ;;  %2281 = vst [vmem:[%s3829_s26 + $0x1c8] sm:$0xff] %v2217_v25  ;;  %v2138_v19 = vadd.f32 %v2137_v6, %v4003_v5  ;;  %v2051_v12 = vadd.f32 %v2050_v10, %v4008_v61  ;;  %v2139_v23 = vpop.f32.mrb[57].mxu1  ;;  %v4209_v20 = vld [vmem:[#allocation34_spill] sm:$0xff]  ;;  %v4210_v25 = vld [vmem:[#allocation35_spill] sm:$0xff] }
 0x218   : > { %2283 = vst [vmem:[%s3829_s26 + $0x1d8] sm:$0xff] %v2219_v31  ;;  %v2172_v15 = vmul.f32 %v2049_v9, %v4197_v28  ;;  %v2140_v41 = vadd.f32 %v2139_v23, %v4016_v32 }
 0x219   : > { %v2174_v53 = vmul.f32 %v2138_v19, %v4198_v24  ;;  %v2173_v18 = vmul.f32 %v2051_v12, %v4199_v42  ;;  %v2054_v43 = vpop.f32.mrb[58].mxu0 }
 0x21a   : > { %2236 = vst [vmem:[%s3829_s26 + $0x60] sm:$0xff] %v2172_v15  ;;  %v2175_v55 = vmul.f32 %v2140_v41, %v4200_v54  ;;  %v2055_v29 = vadd.f32 %v2054_v43, %v3994_v2  ;;  %v2143_v56 = vpop.f32.mrb[58].mxu1  ;;  %v2056_v44 = vpop.f32.mrb[59].mxu0 }
 0x21b   : > { %2238 = vst [vmem:[%s3829_s26 + $0x70] sm:$0xff] %v2174_v53  ;;  %2237 = vst [vmem:[%s3829_s26 + $0x68] sm:$0xff] %v2173_v18  ;;  %v2144_v7 = vadd.f32 %v2143_v56, %v4003_v5  ;;  %v2057_v33 = vadd.f32 %v2056_v44, %v4008_v61  ;;  %v2145_v8 = vpop.f32.mrb[59].mxu1 }
 0x21c   : > { %2239 = vst [vmem:[%s3829_s26 + $0x78] sm:$0xff] %v2175_v55  ;;  %v2188_v26 = vmul.f32 %v2055_v29, %v4201_v22  ;;  %v2146_v57 = vadd.f32 %v2145_v8, %v4016_v32 }
 0x21d   : > { %v2190_v58 = vmul.f32 %v2144_v7, %v4202_v17  ;;  %v2189_v45 = vmul.f32 %v2057_v33, %v4203_v59  ;;  %v2060_v11 = vpop.f32.mrb[60].mxu0 }
 0x21e   : > { %2252 = vst [vmem:[%s3829_s26 + $0xe0] sm:$0xff] %v2188_v26  ;;  %v2191_v46 = vmul.f32 %v2146_v57, %v4204_v37  ;;  %v2061_v47 = vadd.f32 %v2060_v11, %v3994_v2  ;;  %v2149_v48 = vpop.f32.mrb[60].mxu1  ;;  %v2062_v30 = vpop.f32.mrb[61].mxu0 }
 0x21f   : > { %2254 = vst [vmem:[%s3829_s26 + $0xf0] sm:$0xff] %v2190_v58  ;;  %2253 = vst [vmem:[%s3829_s26 + $0xe8] sm:$0xff] %v2189_v45  ;;  %v2150_v13 = vadd.f32 %v2149_v48, %v4003_v5  ;;  %v2063_v60 = vadd.f32 %v2062_v30, %v4008_v61  ;;  %v2151_v35 = vpop.f32.mrb[61].mxu1 }
 0x220   : > { %2255 = vst [vmem:[%s3829_s26 + $0xf8] sm:$0xff] %v2191_v46  ;;  %v2204_v63 = vmul.f32 %v2061_v47, %v4205_v62  ;;  %v2152_v16 = vadd.f32 %v2151_v35, %v4016_v32 }
 0x221   : > { %v2206_v21 = vmul.f32 %v2150_v13, %v4206_v1  ;;  %v2205_v36 = vmul.f32 %v2063_v60, %v4207_v27  ;;  %v2066_v38 = vpop.f32.mrb[62].mxu0 }
 0x222   : > { %2268 = vst [vmem:[%s3829_s26 + $0x160] sm:$0xff] %v2204_v63  ;;  %v2207_v50 = vmul.f32 %v2152_v16, %v4208_v49  ;;  %v2067_v3 = vadd.f32 %v2066_v38, %v3994_v2  ;;  %v2155_v4 = vpop.f32.mrb[62].mxu1  ;;  %v2068_v0 = vpop.f32.mrb[63].mxu0 }
 0x223   : > { %2270 = vst [vmem:[%s3829_s26 + $0x170] sm:$0xff] %v2206_v21  ;;  %2269 = vst [vmem:[%s3829_s26 + $0x168] sm:$0xff] %v2205_v36  ;;  %v2156_v14 = vadd.f32 %v2155_v4, %v4003_v5  ;;  %v2069_v52 = vadd.f32 %v2068_v0, %v4008_v61  ;;  %v2157_v40 = vpop.f32.mrb[63].mxu1  ;;  %v4212_v5 = vld [vmem:[#allocation37_spill] sm:$0xff] }
 0x224   : > { %2271 = vst [vmem:[%s3829_s26 + $0x178] sm:$0xff] %v2207_v50  ;;  %v2220_v2 = vmul.f32 %v2067_v3, %v4209_v20  ;;  %v2158_v39 = vadd.f32 %v2157_v40, %v4016_v32 }
 0x225   : > { %v2222_v51 = vmul.f32 %v2156_v14, %v4210_v25  ;;  %v2221_v31 = vmul.f32 %v2069_v52, %v4211_v34 }
 0x226   : > { %2284 = vst [vmem:[%s3829_s26 + $0x1e0] sm:$0xff] %v2220_v2  ;;  %v2223_v61 = vmul.f32 %v2158_v39, %v4212_v5 }
 0x227   : > { %2286 = vst [vmem:[%s3829_s26 + $0x1f0] sm:$0xff] %v2222_v51  ;;  %2285 = vst [vmem:[%s3829_s26 + $0x1e8] sm:$0xff] %v2221_v31 }
 0x228   : > { %2287 = vst [vmem:[%s3829_s26 + $0x1f8] sm:$0xff] %v2223_v61 }
 0x229   : > { %3057 = shalt.err (!%p3054_p7)
}
 0x22a   : > { %s3058_s25 = scalar_lea.hbm %s4073_s7, 8192  ;;  %s3062_s27 = scalar_lea.hbm %s4134_s5, 16384 }
 0x22b   : > { %p3059_p12 = scmp.ne.s32.totalorder %s4073_s7, %s3058_s25  ;;  %p3063_p9 = scmp.lt.u32.totalorder %s4073_s7, %s4134_s5 }
 0x22c   : > { %p3064_p0 = scmp.lt.u32.totalorder %s3062_s27, %s3058_s25  ;;  %p3066_p4 = scmp.lt.u32.totalorder %s3058_s25, %s4073_s7 }
 0x22d   : > { %p3060_p6 = pnand %p3059_p12, %p3331_p10 }
 0x22e   : > { %p3065_p2 = por %p3064_p0, %p3063_p9 }
 0x22f   : > { %p3061_p11 = pneg %p3060_p6 }
 0x230   : > { %p3067_p8 = por %p3066_p4, %p3065_p2 }
 0x232   : > { %p3068_p1 = pnand %p3067_p8, %p3061_p11 }
 0x234   : > { %3071 = shalt.err (!%p3068_p1)
}
 0x235   : > { %s3150_s28 = smov 2048   ;;  %s3151_s8 = smov 128  }
 0x236   : > { %2812 = dma.vmem_to_hbm [thread:$0]  (%p3331_p10), %s4075_s16, 8192, %s4073_s7, %s2289_s11, %s3150_s28, %s3150_s28, %s3151_s8  }
 0x237 PF: > { %s4213_s12 = sld [smem:[#allocation17_spill]]  ;;  %s2320_s24 = sand.u32 1, %s3118_s18  }
 0x238   : > { %p4215_p3 = scmp.ge.s32.totalorder %s3138_s23, 2  ;;  %s2321_s26 = scalar_lea.sflag [#allocation4], %s2320_s24 }
 0x23d   : > { %p4214_p13 = scmp.ne.s32.totalorder %s4213_s12, 0 }
 0x23f   : > { %p2832_p5 = pnand %p4215_p3, %p4214_p13 }
 0x241   : > { %3113 = dma.done.wait (!%p2832_p5), %s2321_s26, 8192  }
 0x242   : > { %3115 = vsyncadd (!%p2832_p5), %s2321_s26, 4294959104  ;;  %s25_s23 = sadd.s32 1, %s3138_s23   ;;  %s4216_s6 = sld [smem:[#allocation18_spill]] }
 0x243   : > { %p22_p7 = scmp.ge.s32.totalorder %s25_s23, 4   ;;  %s4217_s18 = smov %s3122_s19 }
 0x244   : > { %s4218_s19 = smov %s3126_s20  ;;  %s4219_s20 = smov %s3345_s14 }
 0x245   : > { %s4220_s21 = smov %s3134_s22  ;;  %24 = sbr.rel (!%p22_p7) target bundleno = 14 (0xe), region = 112 }
 0x248   : > { %s4221_s22 = smov %s4216_s6 }
 0x24c   :  { %2326 = vsyncpa [#allocation3], 1 }
 0x24d   :  { %2328 = vsyncpa [#allocation3 + $0x1], 1 }
 0x24e   :  { %2329 = vsyncpa [#allocation6], 1 }
 0x24f   :  { %2330 = vsyncpa [#allocation9], 1 }
 0x250   :  { %2332 = vsyncpa [#allocation9 + $0x1], 1 }
 0x251   :  { %2333 = vsyncpa [#allocation4], 1 }
 0x252   :  { %2335 = vsyncpa [#allocation4 + $0x1], 1 }

</bundles_post_ra>
